<compile_context>
chip_gen: v7x
topology: tpu7x:2x2x1
jax: 0.10.0
libtpu: 0.0.40
codegen_flags: <defaults>
</compile_context>

<pallas_src>
import jax
import jax.numpy as jnp
from jax.experimental import pallas as pl
from jax.experimental.pallas import tpu as pltpu


# ------------------------------- kernel --------------------------------------
def _encoder_kernel(x_ref, adj_ref,
                    wfc_ref, bfc_ref,
                    w1_ref, b1_ref, w2_ref, b2_ref,
                    wga_ref, bg_ref, wzrb_ref, whb_ref,
                    out_ref):
    """One batch element of the encoder (full sequence).

    Shapes seen by the kernel (batch dim squeezed away):
      x_ref   : (T*N, in_ft)        raw node features, time-major flattened
      adj_ref : (T*N, T*N)          block-diagonal (over T) adjacency
      wfc/bfc : (in_ft, hid1) / (1, hid1)        encoder fc
      w1/b1   : (hid1, 3*hid2) / (1, 3*hid2)     fused GCN layer 1 (3 gates)
      w2/b2   : (3*hid2, 3*C) / (1, 3*C)         fused (block-diag) GCN layer 2
      wga/bg  : (3*C, 3*C) / (1, 3*C)  block-diag conv-side gate linears (z|r|h)
      wzrb    : (C, 2*C)            H-side weight of linear_z | linear_r
      whb     : (C, C)              (H*R)-side weight of linear_h
      out_ref : (T, N, C)           hidden states for the whole sequence
    """
    T, N, C = out_ref.shape
    f32 = jnp.float32

    x = x_ref[...]          # (T*N, in_ft)
    adj = adj_ref[...]      # (T*N, T*N)

    # ---------------- non-recurrent, hoisted over the whole sequence ---------
    # Encoder fc + ReLU (feature lift in_ft -> hid1), M = T*N rows.
    xh = jnp.maximum(
        jnp.dot(x, wfc_ref[...], preferred_element_type=f32) + bfc_ref[...],
        0.0)                                                     # (T*N, hid1)

    # Fused 3-gate, 2-layer GCN with block-diagonal-over-T adjacency:
    #   conv = relu(adj @ relu(adj @ (xh @ W1) + b1) @ W2 + b2)
    t1 = jnp.dot(xh, w1_ref[...], preferred_element_type=f32)    # (T*N, 3*hid2)
    t1 = jnp.maximum(
        jnp.dot(adj, t1, preferred_element_type=f32) + b1_ref[...], 0.0)
    t2 = jnp.dot(t1, w2_ref[...], preferred_element_type=f32)    # (T*N, 3*C)
    conv = jnp.maximum(
        jnp.dot(adj, t2, preferred_element_type=f32) + b2_ref[...], 0.0)

    # Conv-side halves of the three gate linears (block-diag weight):
    #   pre[:, 0:2C]  = [conv_z @ Wz_a + bz | conv_r @ Wr_a + br]
    #   pre[:, 2C:3C] =  conv_h @ Wh_a + bh
    pre = jnp.dot(conv, wga_ref[...], preferred_element_type=f32) + bg_ref[...]

    wzrb = wzrb_ref[...]    # (C, 2C)
    whb = whb_ref[...]      # (C, C)

    # ---------------- recurrent GRU-style update (fully unrolled) ------------
    h = jnp.zeros((N, C), f32)
    for t in range(T):                       # static T -> unrolled at trace time
        p = pre[t * N:(t + 1) * N, :]        # (N, 3C), static aligned slice

        zr = jax.nn.sigmoid(
            p[:, :2 * C] + jnp.dot(h, wzrb, preferred_element_type=f32))
        z = zr[:, :C]
        r = zr[:, C:]

        h_tilde = jnp.tanh(
            p[:, 2 * C:] + jnp.dot(h * r, whb, preferred_element_type=f32))

        h = z * h + (1.0 - z) * h_tilde
        out_ref[t] = h


# ------------------------------- wrapper --------------------------------------
def attention_encoder(x, adj, params):
    """x: (B, T, N, in_ft), adj: (B, T, N, N) -> (B, T, N, out_ft)."""
    B, T, N, in_ft = x.shape
    C = params["whb"].shape[0]

    # Time-major flattened features (free metadata reshape).
    x_flat = x.reshape(B, T * N, in_ft)

    # Block-diagonal-over-T adjacency: adj_blk[b, t*N+i, s*N+j] = adj[b,t,i,j]*[t==s].
    eye_t = jnp.eye(T, dtype=adj.dtype)
    adj_blk = (adj[:, :, :, None, :] * eye_t[None, :, None, :, None]
               ).reshape(B, T * N, T * N)

    weight_names = ["wfc", "bfc", "w1f", "b1f", "w2blk", "b2f",
                    "wga", "bg", "wzrb", "whb"]
    weights = [params[k] for k in weight_names]

    def wspec(a):
        nd = a.ndim
        return pl.BlockSpec(a.shape, lambda b, _nd=nd: (0,) * _nd)

    return pl.pallas_call(
        _encoder_kernel,
        out_shape=jax.ShapeDtypeStruct((B, T, N, C), jnp.float32),
        grid_spec=pltpu.PrefetchScalarGridSpec(
            num_scalar_prefetch=0,
            grid=(B,),
            in_specs=[
                pl.BlockSpec((None, T * N, in_ft), lambda b: (b, 0, 0)),
                pl.BlockSpec((None, T * N, T * N), lambda b: (b, 0, 0)),
            ] + [wspec(w) for w in weights],
            out_specs=pl.BlockSpec((None, T, N, C), lambda b: (b, 0, 0, 0)),
        ),
        compiler_params=pltpu.CompilerParams(
            dimension_semantics=("parallel",)),
    )(x_flat, adj_blk, *weights)


# ------------------------- weight packing helpers -----------------------------
def _block_diag(mats):
    rows = sum(m.shape[0] for m in mats)
    cols = sum(m.shape[1] for m in mats)
    out = jnp.zeros((rows, cols), mats[0].dtype)
    r = c = 0
    for m in mats:
        out = out.at[r:r + m.shape[0], c:c + m.shape[1]].set(m)
        r += m.shape[0]
        c += m.shape[1]
    return out


def pack_params(raw, out_ft):
    """Pack per-gate PyTorch-layout weights into the fused kernel layout."""
    C = out_ft
    w1, b1 = raw["w1"], raw["b1"]        # (3, hid2, hid1), (3, hid2)
    w2, b2 = raw["w2"], raw["b2"]        # (3, C, hid2),   (3, C)
    lw, lb = raw["lin_w"], raw["lin_b"]  # (3, C, 2C),     (3, C)
    return {
        "wfc": raw["wfc"].T,                                     # (in_ft, hid1)
        "bfc": raw["bfc"].reshape(1, -1),                        # (1, hid1)
        "w1f": jnp.concatenate([w1[g].T for g in range(3)], 1),  # (hid1, 3*hid2)
        "b1f": jnp.concatenate([b1[g] for g in range(3)]).reshape(1, -1),
        "w2blk": _block_diag([w2[g].T for g in range(3)]),       # (3*hid2, 3*C)
        "b2f": jnp.concatenate([b2[g] for g in range(3)]).reshape(1, -1),
        # Conv-side halves of linear_z / linear_r / linear_h, block-diagonal.
        "wga": _block_diag([lw[g][:, :C].T for g in range(3)]),  # (3C, 3C)
        "bg": jnp.concatenate([lb[g] for g in range(3)]).reshape(1, -1),  # (1,3C)
        # H-side halves: fused [z|r] and separate h.
        "wzrb": jnp.concatenate([lw[0][:, C:].T, lw[1][:, C:].T], 1),  # (C, 2C)
        "whb": lw[2][:, C:].T,                                   # (C, C)
    }


# ----------------------------- pure-JAX reference -----------------------------
def _reference(x, adj, raw, out_ft):
    """Unfused reference mirroring the PyTorch Attention_Encoder forward."""
    B, T, N, _ = x.shape
    C = out_ft
    xh = jax.nn.relu(x @ raw["wfc"].T + raw["bfc"])          # (B, T, N, hid1)

    def gcn2(g, xt, at):
        t1 = jax.nn.relu(
            jnp.einsum("bnm,bmf->bnf", at, xt @ raw["w1"][g].T) + raw["b1"][g])
        t2 = jax.nn.relu(
            jnp.einsum("bnm,bmf->bnf", at, t1 @ raw["w2"][g].T) + raw["b2"][g])
        return t2

    def gate(g, a, b_):
        W, bb = raw["lin_w"][g], raw["lin_b"][g]
        return a @ W[:, :C].T + b_ @ W[:, C:].T + bb

    h = jnp.zeros((B, N, C), jnp.float32)
    outs = []
    for i in range(T):
        xt, at = xh[:, i], adj[:, i]
        Z = jax.nn.sigmoid(gate(0, gcn2(0, xt, at), h))
        R = jax.nn.sigmoid(gate(1, gcn2(1, xt, at), h))
        Ht = jnp.tanh(gate(2, gcn2(2, xt, at), h * R))
        h = Z * h + (1.0 - Z) * Ht
        outs.append(h)
    return jnp.stack(outs, axis=1)


# --------------------------------- main ---------------------------------------
if __name__ == "__main__":
    # Shapes implied by Attention_Encoder.forward: x (B, T, N, in_ft),
    # adj (B, T, N, N), output (B, T, N, out_ft).  T*N = 128 (one MXU tile).
    B, T, N = 2, 8, 16
    in_ft, hid_ft1, hid_ft2, out_ft = 4, 8, 32, 8

    key = jax.random.PRNGKey(0)
    ks = jax.random.split(key, 16)

    x = jax.random.normal(ks[0], (B, T, N, in_ft), jnp.float32)
    adj = jax.random.uniform(ks[1], (B, T, N, N), jnp.float32)
    adj = adj / jnp.sum(adj, axis=-1, keepdims=True)   # row-normalized adjacency

    def xavier(k, shape):
        fan_out, fan_in = shape
        lim = (6.0 / (fan_in + fan_out)) ** 0.5
        return jax.random.uniform(k, shape, jnp.float32, -lim, lim)

    raw = {
        "wfc": xavier(ks[2], (hid_ft1, in_ft)),
        "bfc": 0.01 * jax.random.normal(ks[3], (hid_ft1,), jnp.float32),
        # GCN layer weights per gate (z, r, h); GCN biases init to 0.
        "w1": jnp.stack([xavier(ks[4 + g], (hid_ft2, hid_ft1)) for g in range(3)]),
        "b1": jnp.zeros((3, hid_ft2), jnp.float32),
        "w2": jnp.stack([xavier(ks[7 + g], (out_ft, hid_ft2)) for g in range(3)]),
        "b2": jnp.zeros((3, out_ft), jnp.float32),
        # Gate linear layers over cat([conv, H], -1): weight (C, 2C), bias (C,).
        "lin_w": jnp.stack([xavier(ks[10 + g], (out_ft, 2 * out_ft)) for g in range(3)]),
        "lin_b": 0.01 * jax.random.normal(ks[13], (3, out_ft), jnp.float32),
    }

    params = pack_params(raw, out_ft)

    out = jax.block_until_ready(attention_encoder(x, adj, params))
    ref = jax.block_until_ready(_reference(x, adj, raw, out_ft))

    assert out.shape == (B, T, N, out_ft)
    assert jnp.allclose(out, ref, atol=5e-4, rtol=5e-4), (
        float(jnp.max(jnp.abs(out - ref))))
    print("KERNEL_OK")
</pallas_src>

<mosaic_0001>
module attributes {stable_mosaic.version = 11 : i64} {
  func.func @_encoder_kernel(%arg0: i32, %arg1: memref<1x128x4xf32, #tpu.memory_space<vmem>>, %arg2: memref<1x128x128xf32, #tpu.memory_space<vmem>>, %arg3: memref<4x8xf32, #tpu.memory_space<vmem>>, %arg4: memref<1x8xf32, #tpu.memory_space<vmem>>, %arg5: memref<8x96xf32, #tpu.memory_space<vmem>>, %arg6: memref<1x96xf32, #tpu.memory_space<vmem>>, %arg7: memref<96x24xf32, #tpu.memory_space<vmem>>, %arg8: memref<1x24xf32, #tpu.memory_space<vmem>>, %arg9: memref<24x24xf32, #tpu.memory_space<vmem>>, %arg10: memref<1x24xf32, #tpu.memory_space<vmem>>, %arg11: memref<8x16xf32, #tpu.memory_space<vmem>>, %arg12: memref<8x8xf32, #tpu.memory_space<vmem>>, %arg13: memref<1x8x16x8xf32, #tpu.memory_space<vmem>>) attributes {dimension_semantics = [#tpu.dimension_semantics<parallel>], iteration_bounds = array<i64: 2>, scalar_prefetch = 0 : i64, scratch_operands = 0 : i64, tpu.core_type = #tpu.core_type<tc>, window_params = [{transform_indices = @transform_0, window_bounds = array<i64: 1, 128, 4>}, {transform_indices = @transform_1, window_bounds = array<i64: 1, 128, 128>}, {pipeline_mode = #tpu.pipeline_mode<synchronous>, transform_indices = @transform_2, window_bounds = array<i64: 4, 8>}, {pipeline_mode = #tpu.pipeline_mode<synchronous>, transform_indices = @transform_3, window_bounds = array<i64: 1, 8>}, {pipeline_mode = #tpu.pipeline_mode<synchronous>, transform_indices = @transform_4, window_bounds = array<i64: 8, 96>}, {pipeline_mode = #tpu.pipeline_mode<synchronous>, transform_indices = @transform_5, window_bounds = array<i64: 1, 96>}, {pipeline_mode = #tpu.pipeline_mode<synchronous>, transform_indices = @transform_6, window_bounds = array<i64: 96, 24>}, {pipeline_mode = #tpu.pipeline_mode<synchronous>, transform_indices = @transform_7, window_bounds = array<i64: 1, 24>}, {pipeline_mode = #tpu.pipeline_mode<synchronous>, transform_indices = @transform_8, window_bounds = array<i64: 24, 24>}, {pipeline_mode = #tpu.pipeline_mode<synchronous>, transform_indices = @transform_9, window_bounds = array<i64: 1, 24>}, {pipeline_mode = #tpu.pipeline_mode<synchronous>, transform_indices = @transform_10, window_bounds = array<i64: 8, 16>}, {pipeline_mode = #tpu.pipeline_mode<synchronous>, transform_indices = @transform_11, window_bounds = array<i64: 8, 8>}, {transform_indices = @transform_12, window_bounds = array<i64: 1, 8, 16, 8>}]} {
    %c0 = arith.constant 0 : index
    %c0_0 = arith.constant 0 : index
    %c0_1 = arith.constant 0 : index
    %0 = vector.load %arg1[%c0, %c0_0, %c0_1] : memref<1x128x4xf32, #tpu.memory_space<vmem>>, vector<1x128x4xf32>
    %1 = vector.shape_cast %0 : vector<1x128x4xf32> to vector<128x4xf32>
    %c0_2 = arith.constant 0 : index
    %c0_3 = arith.constant 0 : index
    %c0_4 = arith.constant 0 : index
    %2 = vector.load %arg2[%c0_2, %c0_3, %c0_4] : memref<1x128x128xf32, #tpu.memory_space<vmem>>, vector<1x128x128xf32>
    %3 = vector.shape_cast %2 : vector<1x128x128xf32> to vector<128x128xf32>
    %c0_5 = arith.constant 0 : index
    %c0_6 = arith.constant 0 : index
    %4 = vector.load %arg3[%c0_5, %c0_6] : memref<4x8xf32, #tpu.memory_space<vmem>>, vector<4x8xf32>
    %cst = arith.constant dense<0.000000e+00> : vector<128x8xf32>
    %5 = tpu.matmul %1, %4, %cst {dimension_numbers = #tpu.dot_dimension_numbers<[1], [0], [0], [1], [0, 0, 1, 1], [], []>} : vector<128x4xf32>, vector<4x8xf32>, vector<128x8xf32> -> vector<128x8xf32>
    %c0_7 = arith.constant 0 : index
    %c0_8 = arith.constant 0 : index
    %6 = vector.load %arg4[%c0_7, %c0_8] : memref<1x8xf32, #tpu.memory_space<vmem>>, vector<1x8xf32>
    %7 = vector.broadcast %6 : vector<1x8xf32> to vector<128x8xf32>
    %8 = arith.addf %5, %7 : vector<128x8xf32>
    %cst_9 = arith.constant 0.000000e+00 : f32
    %9 = vector.broadcast %cst_9 : f32 to vector<128x8xf32>
    %10 = arith.maximumf %8, %9 : vector<128x8xf32>
    %c0_10 = arith.constant 0 : index
    %c0_11 = arith.constant 0 : index
    %11 = vector.load %arg5[%c0_10, %c0_11] : memref<8x96xf32, #tpu.memory_space<vmem>>, vector<8x96xf32>
    %cst_12 = arith.constant dense<0.000000e+00> : vector<128x96xf32>
    %12 = tpu.matmul %10, %11, %cst_12 {dimension_numbers = #tpu.dot_dimension_numbers<[1], [0], [0], [1], [0, 0, 1, 1], [], []>} : vector<128x8xf32>, vector<8x96xf32>, vector<128x96xf32> -> vector<128x96xf32>
    %cst_13 = arith.constant dense<0.000000e+00> : vector<128x96xf32>
    %13 = tpu.matmul %3, %12, %cst_13 {dimension_numbers = #tpu.dot_dimension_numbers<[1], [0], [0], [1], [0, 0, 1, 1], [], []>} : vector<128x128xf32>, vector<128x96xf32>, vector<128x96xf32> -> vector<128x96xf32>
    %c0_14 = arith.constant 0 : index
    %c0_15 = arith.constant 0 : index
    %14 = vector.load %arg6[%c0_14, %c0_15] : memref<1x96xf32, #tpu.memory_space<vmem>>, vector<1x96xf32>
    %15 = vector.broadcast %14 : vector<1x96xf32> to vector<128x96xf32>
    %16 = arith.addf %13, %15 : vector<128x96xf32>
    %cst_16 = arith.constant 0.000000e+00 : f32
    %17 = vector.broadcast %cst_16 : f32 to vector<128x96xf32>
    %18 = arith.maximumf %16, %17 : vector<128x96xf32>
    %c0_17 = arith.constant 0 : index
    %c0_18 = arith.constant 0 : index
    %19 = vector.load %arg7[%c0_17, %c0_18] : memref<96x24xf32, #tpu.memory_space<vmem>>, vector<96x24xf32>
    %cst_19 = arith.constant dense<0.000000e+00> : vector<128x24xf32>
    %20 = tpu.matmul %18, %19, %cst_19 {dimension_numbers = #tpu.dot_dimension_numbers<[1], [0], [0], [1], [0, 0, 1, 1], [], []>} : vector<128x96xf32>, vector<96x24xf32>, vector<128x24xf32> -> vector<128x24xf32>
    %cst_20 = arith.constant dense<0.000000e+00> : vector<128x24xf32>
    %21 = tpu.matmul %3, %20, %cst_20 {dimension_numbers = #tpu.dot_dimension_numbers<[1], [0], [0], [1], [0, 0, 1, 1], [], []>} : vector<128x128xf32>, vector<128x24xf32>, vector<128x24xf32> -> vector<128x24xf32>
    %c0_21 = arith.constant 0 : index
    %c0_22 = arith.constant 0 : index
    %22 = vector.load %arg8[%c0_21, %c0_22] : memref<1x24xf32, #tpu.memory_space<vmem>>, vector<1x24xf32>
    %23 = vector.broadcast %22 : vector<1x24xf32> to vector<128x24xf32>
    %24 = arith.addf %21, %23 : vector<128x24xf32>
    %cst_23 = arith.constant 0.000000e+00 : f32
    %25 = vector.broadcast %cst_23 : f32 to vector<128x24xf32>
    %26 = arith.maximumf %24, %25 : vector<128x24xf32>
    %c0_24 = arith.constant 0 : index
    %c0_25 = arith.constant 0 : index
    %27 = vector.load %arg9[%c0_24, %c0_25] : memref<24x24xf32, #tpu.memory_space<vmem>>, vector<24x24xf32>
    %cst_26 = arith.constant dense<0.000000e+00> : vector<128x24xf32>
    %28 = tpu.matmul %26, %27, %cst_26 {dimension_numbers = #tpu.dot_dimension_numbers<[1], [0], [0], [1], [0, 0, 1, 1], [], []>} : vector<128x24xf32>, vector<24x24xf32>, vector<128x24xf32> -> vector<128x24xf32>
    %c0_27 = arith.constant 0 : index
    %c0_28 = arith.constant 0 : index
    %29 = vector.load %arg10[%c0_27, %c0_28] : memref<1x24xf32, #tpu.memory_space<vmem>>, vector<1x24xf32>
    %30 = vector.broadcast %29 : vector<1x24xf32> to vector<128x24xf32>
    %31 = arith.addf %28, %30 : vector<128x24xf32>
    %c0_29 = arith.constant 0 : index
    %c0_30 = arith.constant 0 : index
    %32 = vector.load %arg11[%c0_29, %c0_30] : memref<8x16xf32, #tpu.memory_space<vmem>>, vector<8x16xf32>
    %c0_31 = arith.constant 0 : index
    %c0_32 = arith.constant 0 : index
    %33 = vector.load %arg12[%c0_31, %c0_32] : memref<8x8xf32, #tpu.memory_space<vmem>>, vector<8x8xf32>
    %cst_33 = arith.constant 0.000000e+00 : f32
    %34 = vector.broadcast %cst_33 : f32 to vector<16x8xf32>
    %35 = vector.extract_strided_slice %31 {offsets = [0, 0], sizes = [16, 24], strides = [1, 1]} : vector<128x24xf32> to vector<16x24xf32>
    %36 = vector.extract_strided_slice %35 {offsets = [0, 0], sizes = [16, 16], strides = [1, 1]} : vector<16x24xf32> to vector<16x16xf32>
    %cst_34 = arith.constant dense<0.000000e+00> : vector<16x16xf32>
    %37 = tpu.matmul %34, %32, %cst_34 {dimension_numbers = #tpu.dot_dimension_numbers<[1], [0], [0], [1], [0, 0, 1, 1], [], []>} : vector<16x8xf32>, vector<8x16xf32>, vector<16x16xf32> -> vector<16x16xf32>
    %38 = arith.addf %36, %37 : vector<16x16xf32>
    %39 = arith.negf %38 : vector<16x16xf32>
    %40 = math.exp %39 : vector<16x16xf32>
    %cst_35 = arith.constant 1.000000e+00 : f32
    %41 = vector.broadcast %cst_35 : f32 to vector<16x16xf32>
    %42 = arith.addf %41, %40 : vector<16x16xf32>
    %43 = arith.divf %41, %42 : vector<16x16xf32>
    %44 = vector.extract_strided_slice %43 {offsets = [0, 0], sizes = [16, 8], strides = [1, 1]} : vector<16x16xf32> to vector<16x8xf32>
    %45 = vector.extract_strided_slice %43 {offsets = [0, 8], sizes = [16, 8], strides = [1, 1]} : vector<16x16xf32> to vector<16x8xf32>
    %46 = vector.extract_strided_slice %35 {offsets = [0, 16], sizes = [16, 8], strides = [1, 1]} : vector<16x24xf32> to vector<16x8xf32>
    %47 = arith.mulf %34, %45 : vector<16x8xf32>
    %cst_36 = arith.constant dense<0.000000e+00> : vector<16x8xf32>
    %48 = tpu.matmul %47, %33, %cst_36 {dimension_numbers = #tpu.dot_dimension_numbers<[1], [0], [0], [1], [0, 0, 1, 1], [], []>} : vector<16x8xf32>, vector<8x8xf32>, vector<16x8xf32> -> vector<16x8xf32>
    %49 = arith.addf %46, %48 : vector<16x8xf32>
    %50 = math.tanh %49 : vector<16x8xf32>
    %51 = arith.mulf %44, %34 : vector<16x8xf32>
    %cst_37 = arith.constant 1.000000e+00 : f32
    %52 = vector.broadcast %cst_37 : f32 to vector<16x8xf32>
    %53 = arith.subf %52, %44 : vector<16x8xf32>
    %54 = arith.mulf %53, %50 : vector<16x8xf32>
    %55 = arith.addf %51, %54 : vector<16x8xf32>
    %c0_38 = arith.constant 0 : index
    %c0_39 = arith.constant 0 : index
    %c0_40 = arith.constant 0 : index
    %c0_41 = arith.constant 0 : index
    %56 = vector.load %arg13[%c0_38, %c0_39, %c0_40, %c0_41] : memref<1x8x16x8xf32, #tpu.memory_space<vmem>>, vector<1x1x16x8xf32>
    %57 = vector.shape_cast %56 : vector<1x1x16x8xf32> to vector<16x8xf32>
    %58 = vector.shape_cast %55 : vector<16x8xf32> to vector<1x1x16x8xf32>
    tpu.vector_store %arg13[%c0_38, %c0_39, %c0_40, %c0_41], %58 {strides = array<i32>} : memref<1x8x16x8xf32, #tpu.memory_space<vmem>>, vector<1x1x16x8xf32>,
    %59 = vector.extract_strided_slice %31 {offsets = [16, 0], sizes = [16, 24], strides = [1, 1]} : vector<128x24xf32> to vector<16x24xf32>
    %60 = vector.extract_strided_slice %59 {offsets = [0, 0], sizes = [16, 16], strides = [1, 1]} : vector<16x24xf32> to vector<16x16xf32>
    %cst_42 = arith.constant dense<0.000000e+00> : vector<16x16xf32>
    %61 = tpu.matmul %55, %32, %cst_42 {dimension_numbers = #tpu.dot_dimension_numbers<[1], [0], [0], [1], [0, 0, 1, 1], [], []>} : vector<16x8xf32>, vector<8x16xf32>, vector<16x16xf32> -> vector<16x16xf32>
    %62 = arith.addf %60, %61 : vector<16x16xf32>
    %63 = arith.negf %62 : vector<16x16xf32>
    %64 = math.exp %63 : vector<16x16xf32>
    %cst_43 = arith.constant 1.000000e+00 : f32
    %65 = vector.broadcast %cst_43 : f32 to vector<16x16xf32>
    %66 = arith.addf %65, %64 : vector<16x16xf32>
    %67 = arith.divf %65, %66 : vector<16x16xf32>
    %68 = vector.extract_strided_slice %67 {offsets = [0, 0], sizes = [16, 8], strides = [1, 1]} : vector<16x16xf32> to vector<16x8xf32>
    %69 = vector.extract_strided_slice %67 {offsets = [0, 8], sizes = [16, 8], strides = [1, 1]} : vector<16x16xf32> to vector<16x8xf32>
    %70 = vector.extract_strided_slice %59 {offsets = [0, 16], sizes = [16, 8], strides = [1, 1]} : vector<16x24xf32> to vector<16x8xf32>
    %71 = arith.mulf %55, %69 : vector<16x8xf32>
    %cst_44 = arith.constant dense<0.000000e+00> : vector<16x8xf32>
    %72 = tpu.matmul %71, %33, %cst_44 {dimension_numbers = #tpu.dot_dimension_numbers<[1], [0], [0], [1], [0, 0, 1, 1], [], []>} : vector<16x8xf32>, vector<8x8xf32>, vector<16x8xf32> -> vector<16x8xf32>
    %73 = arith.addf %70, %72 : vector<16x8xf32>
    %74 = math.tanh %73 : vector<16x8xf32>
    %75 = arith.mulf %68, %55 : vector<16x8xf32>
    %cst_45 = arith.constant 1.000000e+00 : f32
    %76 = vector.broadcast %cst_45 : f32 to vector<16x8xf32>
    %77 = arith.subf %76, %68 : vector<16x8xf32>
    %78 = arith.mulf %77, %74 : vector<16x8xf32>
    %79 = arith.addf %75, %78 : vector<16x8xf32>
    %c0_46 = arith.constant 0 : index
    %c1 = arith.constant 1 : index
    %c0_47 = arith.constant 0 : index
    %c0_48 = arith.constant 0 : index
    %80 = vector.load %arg13[%c0_46, %c1, %c0_47, %c0_48] : memref<1x8x16x8xf32, #tpu.memory_space<vmem>>, vector<1x1x16x8xf32>
    %81 = vector.shape_cast %80 : vector<1x1x16x8xf32> to vector<16x8xf32>
    %82 = vector.shape_cast %79 : vector<16x8xf32> to vector<1x1x16x8xf32>
    tpu.vector_store %arg13[%c0_46, %c1, %c0_47, %c0_48], %82 {strides = array<i32>} : memref<1x8x16x8xf32, #tpu.memory_space<vmem>>, vector<1x1x16x8xf32>,
    %83 = vector.extract_strided_slice %31 {offsets = [32, 0], sizes = [16, 24], strides = [1, 1]} : vector<128x24xf32> to vector<16x24xf32>
    %84 = vector.extract_strided_slice %83 {offsets = [0, 0], sizes = [16, 16], strides = [1, 1]} : vector<16x24xf32> to vector<16x16xf32>
    %cst_49 = arith.constant dense<0.000000e+00> : vector<16x16xf32>
    %85 = tpu.matmul %79, %32, %cst_49 {dimension_numbers = #tpu.dot_dimension_numbers<[1], [0], [0], [1], [0, 0, 1, 1], [], []>} : vector<16x8xf32>, vector<8x16xf32>, vector<16x16xf32> -> vector<16x16xf32>
    %86 = arith.addf %84, %85 : vector<16x16xf32>
    %87 = arith.negf %86 : vector<16x16xf32>
    %88 = math.exp %87 : vector<16x16xf32>
    %cst_50 = arith.constant 1.000000e+00 : f32
    %89 = vector.broadcast %cst_50 : f32 to vector<16x16xf32>
    %90 = arith.addf %89, %88 : vector<16x16xf32>
    %91 = arith.divf %89, %90 : vector<16x16xf32>
    %92 = vector.extract_strided_slice %91 {offsets = [0, 0], sizes = [16, 8], strides = [1, 1]} : vector<16x16xf32> to vector<16x8xf32>
    %93 = vector.extract_strided_slice %91 {offsets = [0, 8], sizes = [16, 8], strides = [1, 1]} : vector<16x16xf32> to vector<16x8xf32>
    %94 = vector.extract_strided_slice %83 {offsets = [0, 16], sizes = [16, 8], strides = [1, 1]} : vector<16x24xf32> to vector<16x8xf32>
    %95 = arith.mulf %79, %93 : vector<16x8xf32>
    %cst_51 = arith.constant dense<0.000000e+00> : vector<16x8xf32>
    %96 = tpu.matmul %95, %33, %cst_51 {dimension_numbers = #tpu.dot_dimension_numbers<[1], [0], [0], [1], [0, 0, 1, 1], [], []>} : vector<16x8xf32>, vector<8x8xf32>, vector<16x8xf32> -> vector<16x8xf32>
    %97 = arith.addf %94, %96 : vector<16x8xf32>
    %98 = math.tanh %97 : vector<16x8xf32>
    %99 = arith.mulf %92, %79 : vector<16x8xf32>
    %cst_52 = arith.constant 1.000000e+00 : f32
    %100 = vector.broadcast %cst_52 : f32 to vector<16x8xf32>
    %101 = arith.subf %100, %92 : vector<16x8xf32>
    %102 = arith.mulf %101, %98 : vector<16x8xf32>
    %103 = arith.addf %99, %102 : vector<16x8xf32>
    %c0_53 = arith.constant 0 : index
    %c2 = arith.constant 2 : index
    %c0_54 = arith.constant 0 : index
    %c0_55 = arith.constant 0 : index
    %104 = vector.load %arg13[%c0_53, %c2, %c0_54, %c0_55] : memref<1x8x16x8xf32, #tpu.memory_space<vmem>>, vector<1x1x16x8xf32>
    %105 = vector.shape_cast %104 : vector<1x1x16x8xf32> to vector<16x8xf32>
    %106 = vector.shape_cast %103 : vector<16x8xf32> to vector<1x1x16x8xf32>
    tpu.vector_store %arg13[%c0_53, %c2, %c0_54, %c0_55], %106 {strides = array<i32>} : memref<1x8x16x8xf32, #tpu.memory_space<vmem>>, vector<1x1x16x8xf32>,
    %107 = vector.extract_strided_slice %31 {offsets = [48, 0], sizes = [16, 24], strides = [1, 1]} : vector<128x24xf32> to vector<16x24xf32>
    %108 = vector.extract_strided_slice %107 {offsets = [0, 0], sizes = [16, 16], strides = [1, 1]} : vector<16x24xf32> to vector<16x16xf32>
    %cst_56 = arith.constant dense<0.000000e+00> : vector<16x16xf32>
    %109 = tpu.matmul %103, %32, %cst_56 {dimension_numbers = #tpu.dot_dimension_numbers<[1], [0], [0], [1], [0, 0, 1, 1], [], []>} : vector<16x8xf32>, vector<8x16xf32>, vector<16x16xf32> -> vector<16x16xf32>
    %110 = arith.addf %108, %109 : vector<16x16xf32>
    %111 = arith.negf %110 : vector<16x16xf32>
    %112 = math.exp %111 : vector<16x16xf32>
    %cst_57 = arith.constant 1.000000e+00 : f32
    %113 = vector.broadcast %cst_57 : f32 to vector<16x16xf32>
    %114 = arith.addf %113, %112 : vector<16x16xf32>
    %115 = arith.divf %113, %114 : vector<16x16xf32>
    %116 = vector.extract_strided_slice %115 {offsets = [0, 0], sizes = [16, 8], strides = [1, 1]} : vector<16x16xf32> to vector<16x8xf32>
    %117 = vector.extract_strided_slice %115 {offsets = [0, 8], sizes = [16, 8], strides = [1, 1]} : vector<16x16xf32> to vector<16x8xf32>
    %118 = vector.extract_strided_slice %107 {offsets = [0, 16], sizes = [16, 8], strides = [1, 1]} : vector<16x24xf32> to vector<16x8xf32>
    %119 = arith.mulf %103, %117 : vector<16x8xf32>
    %cst_58 = arith.constant dense<0.000000e+00> : vector<16x8xf32>
    %120 = tpu.matmul %119, %33, %cst_58 {dimension_numbers = #tpu.dot_dimension_numbers<[1], [0], [0], [1], [0, 0, 1, 1], [], []>} : vector<16x8xf32>, vector<8x8xf32>, vector<16x8xf32> -> vector<16x8xf32>
    %121 = arith.addf %118, %120 : vector<16x8xf32>
    %122 = math.tanh %121 : vector<16x8xf32>
    %123 = arith.mulf %116, %103 : vector<16x8xf32>
    %cst_59 = arith.constant 1.000000e+00 : f32
    %124 = vector.broadcast %cst_59 : f32 to vector<16x8xf32>
    %125 = arith.subf %124, %116 : vector<16x8xf32>
    %126 = arith.mulf %125, %122 : vector<16x8xf32>
    %127 = arith.addf %123, %126 : vector<16x8xf32>
    %c0_60 = arith.constant 0 : index
    %c3 = arith.constant 3 : index
    %c0_61 = arith.constant 0 : index
    %c0_62 = arith.constant 0 : index
    %128 = vector.load %arg13[%c0_60, %c3, %c0_61, %c0_62] : memref<1x8x16x8xf32, #tpu.memory_space<vmem>>, vector<1x1x16x8xf32>
    %129 = vector.shape_cast %128 : vector<1x1x16x8xf32> to vector<16x8xf32>
    %130 = vector.shape_cast %127 : vector<16x8xf32> to vector<1x1x16x8xf32>
    tpu.vector_store %arg13[%c0_60, %c3, %c0_61, %c0_62], %130 {strides = array<i32>} : memref<1x8x16x8xf32, #tpu.memory_space<vmem>>, vector<1x1x16x8xf32>,
    %131 = vector.extract_strided_slice %31 {offsets = [64, 0], sizes = [16, 24], strides = [1, 1]} : vector<128x24xf32> to vector<16x24xf32>
    %132 = vector.extract_strided_slice %131 {offsets = [0, 0], sizes = [16, 16], strides = [1, 1]} : vector<16x24xf32> to vector<16x16xf32>
    %cst_63 = arith.constant dense<0.000000e+00> : vector<16x16xf32>
    %133 = tpu.matmul %127, %32, %cst_63 {dimension_numbers = #tpu.dot_dimension_numbers<[1], [0], [0], [1], [0, 0, 1, 1], [], []>} : vector<16x8xf32>, vector<8x16xf32>, vector<16x16xf32> -> vector<16x16xf32>
    %134 = arith.addf %132, %133 : vector<16x16xf32>
    %135 = arith.negf %134 : vector<16x16xf32>
    %136 = math.exp %135 : vector<16x16xf32>
    %cst_64 = arith.constant 1.000000e+00 : f32
    %137 = vector.broadcast %cst_64 : f32 to vector<16x16xf32>
    %138 = arith.addf %137, %136 : vector<16x16xf32>
    %139 = arith.divf %137, %138 : vector<16x16xf32>
    %140 = vector.extract_strided_slice %139 {offsets = [0, 0], sizes = [16, 8], strides = [1, 1]} : vector<16x16xf32> to vector<16x8xf32>
    %141 = vector.extract_strided_slice %139 {offsets = [0, 8], sizes = [16, 8], strides = [1, 1]} : vector<16x16xf32> to vector<16x8xf32>
    %142 = vector.extract_strided_slice %131 {offsets = [0, 16], sizes = [16, 8], strides = [1, 1]} : vector<16x24xf32> to vector<16x8xf32>
    %143 = arith.mulf %127, %141 : vector<16x8xf32>
    %cst_65 = arith.constant dense<0.000000e+00> : vector<16x8xf32>
    %144 = tpu.matmul %143, %33, %cst_65 {dimension_numbers = #tpu.dot_dimension_numbers<[1], [0], [0], [1], [0, 0, 1, 1], [], []>} : vector<16x8xf32>, vector<8x8xf32>, vector<16x8xf32> -> vector<16x8xf32>
    %145 = arith.addf %142, %144 : vector<16x8xf32>
    %146 = math.tanh %145 : vector<16x8xf32>
    %147 = arith.mulf %140, %127 : vector<16x8xf32>
    %cst_66 = arith.constant 1.000000e+00 : f32
    %148 = vector.broadcast %cst_66 : f32 to vector<16x8xf32>
    %149 = arith.subf %148, %140 : vector<16x8xf32>
    %150 = arith.mulf %149, %146 : vector<16x8xf32>
    %151 = arith.addf %147, %150 : vector<16x8xf32>
    %c0_67 = arith.constant 0 : index
    %c4 = arith.constant 4 : index
    %c0_68 = arith.constant 0 : index
    %c0_69 = arith.constant 0 : index
    %152 = vector.load %arg13[%c0_67, %c4, %c0_68, %c0_69] : memref<1x8x16x8xf32, #tpu.memory_space<vmem>>, vector<1x1x16x8xf32>
    %153 = vector.shape_cast %152 : vector<1x1x16x8xf32> to vector<16x8xf32>
    %154 = vector.shape_cast %151 : vector<16x8xf32> to vector<1x1x16x8xf32>
    tpu.vector_store %arg13[%c0_67, %c4, %c0_68, %c0_69], %154 {strides = array<i32>} : memref<1x8x16x8xf32, #tpu.memory_space<vmem>>, vector<1x1x16x8xf32>,
    %155 = vector.extract_strided_slice %31 {offsets = [80, 0], sizes = [16, 24], strides = [1, 1]} : vector<128x24xf32> to vector<16x24xf32>
    %156 = vector.extract_strided_slice %155 {offsets = [0, 0], sizes = [16, 16], strides = [1, 1]} : vector<16x24xf32> to vector<16x16xf32>
    %cst_70 = arith.constant dense<0.000000e+00> : vector<16x16xf32>
    %157 = tpu.matmul %151, %32, %cst_70 {dimension_numbers = #tpu.dot_dimension_numbers<[1], [0], [0], [1], [0, 0, 1, 1], [], []>} : vector<16x8xf32>, vector<8x16xf32>, vector<16x16xf32> -> vector<16x16xf32>
    %158 = arith.addf %156, %157 : vector<16x16xf32>
    %159 = arith.negf %158 : vector<16x16xf32>
    %160 = math.exp %159 : vector<16x16xf32>
    %cst_71 = arith.constant 1.000000e+00 : f32
    %161 = vector.broadcast %cst_71 : f32 to vector<16x16xf32>
    %162 = arith.addf %161, %160 : vector<16x16xf32>
    %163 = arith.divf %161, %162 : vector<16x16xf32>
    %164 = vector.extract_strided_slice %163 {offsets = [0, 0], sizes = [16, 8], strides = [1, 1]} : vector<16x16xf32> to vector<16x8xf32>
    %165 = vector.extract_strided_slice %163 {offsets = [0, 8], sizes = [16, 8], strides = [1, 1]} : vector<16x16xf32> to vector<16x8xf32>
    %166 = vector.extract_strided_slice %155 {offsets = [0, 16], sizes = [16, 8], strides = [1, 1]} : vector<16x24xf32> to vector<16x8xf32>
    %167 = arith.mulf %151, %165 : vector<16x8xf32>
    %cst_72 = arith.constant dense<0.000000e+00> : vector<16x8xf32>
    %168 = tpu.matmul %167, %33, %cst_72 {dimension_numbers = #tpu.dot_dimension_numbers<[1], [0], [0], [1], [0, 0, 1, 1], [], []>} : vector<16x8xf32>, vector<8x8xf32>, vector<16x8xf32> -> vector<16x8xf32>
    %169 = arith.addf %166, %168 : vector<16x8xf32>
    %170 = math.tanh %169 : vector<16x8xf32>
    %171 = arith.mulf %164, %151 : vector<16x8xf32>
    %cst_73 = arith.constant 1.000000e+00 : f32
    %172 = vector.broadcast %cst_73 : f32 to vector<16x8xf32>
    %173 = arith.subf %172, %164 : vector<16x8xf32>
    %174 = arith.mulf %173, %170 : vector<16x8xf32>
    %175 = arith.addf %171, %174 : vector<16x8xf32>
    %c0_74 = arith.constant 0 : index
    %c5 = arith.constant 5 : index
    %c0_75 = arith.constant 0 : index
    %c0_76 = arith.constant 0 : index
    %176 = vector.load %arg13[%c0_74, %c5, %c0_75, %c0_76] : memref<1x8x16x8xf32, #tpu.memory_space<vmem>>, vector<1x1x16x8xf32>
    %177 = vector.shape_cast %176 : vector<1x1x16x8xf32> to vector<16x8xf32>
    %178 = vector.shape_cast %175 : vector<16x8xf32> to vector<1x1x16x8xf32>
    tpu.vector_store %arg13[%c0_74, %c5, %c0_75, %c0_76], %178 {strides = array<i32>} : memref<1x8x16x8xf32, #tpu.memory_space<vmem>>, vector<1x1x16x8xf32>,
    %179 = vector.extract_strided_slice %31 {offsets = [96, 0], sizes = [16, 24], strides = [1, 1]} : vector<128x24xf32> to vector<16x24xf32>
    %180 = vector.extract_strided_slice %179 {offsets = [0, 0], sizes = [16, 16], strides = [1, 1]} : vector<16x24xf32> to vector<16x16xf32>
    %cst_77 = arith.constant dense<0.000000e+00> : vector<16x16xf32>
    %181 = tpu.matmul %175, %32, %cst_77 {dimension_numbers = #tpu.dot_dimension_numbers<[1], [0], [0], [1], [0, 0, 1, 1], [], []>} : vector<16x8xf32>, vector<8x16xf32>, vector<16x16xf32> -> vector<16x16xf32>
    %182 = arith.addf %180, %181 : vector<16x16xf32>
    %183 = arith.negf %182 : vector<16x16xf32>
    %184 = math.exp %183 : vector<16x16xf32>
    %cst_78 = arith.constant 1.000000e+00 : f32
    %185 = vector.broadcast %cst_78 : f32 to vector<16x16xf32>
    %186 = arith.addf %185, %184 : vector<16x16xf32>
    %187 = arith.divf %185, %186 : vector<16x16xf32>
    %188 = vector.extract_strided_slice %187 {offsets = [0, 0], sizes = [16, 8], strides = [1, 1]} : vector<16x16xf32> to vector<16x8xf32>
    %189 = vector.extract_strided_slice %187 {offsets = [0, 8], sizes = [16, 8], strides = [1, 1]} : vector<16x16xf32> to vector<16x8xf32>
    %190 = vector.extract_strided_slice %179 {offsets = [0, 16], sizes = [16, 8], strides = [1, 1]} : vector<16x24xf32> to vector<16x8xf32>
    %191 = arith.mulf %175, %189 : vector<16x8xf32>
    %cst_79 = arith.constant dense<0.000000e+00> : vector<16x8xf32>
    %192 = tpu.matmul %191, %33, %cst_79 {dimension_numbers = #tpu.dot_dimension_numbers<[1], [0], [0], [1], [0, 0, 1, 1], [], []>} : vector<16x8xf32>, vector<8x8xf32>, vector<16x8xf32> -> vector<16x8xf32>
    %193 = arith.addf %190, %192 : vector<16x8xf32>
    %194 = math.tanh %193 : vector<16x8xf32>
    %195 = arith.mulf %188, %175 : vector<16x8xf32>
    %cst_80 = arith.constant 1.000000e+00 : f32
    %196 = vector.broadcast %cst_80 : f32 to vector<16x8xf32>
    %197 = arith.subf %196, %188 : vector<16x8xf32>
    %198 = arith.mulf %197, %194 : vector<16x8xf32>
    %199 = arith.addf %195, %198 : vector<16x8xf32>
    %c0_81 = arith.constant 0 : index
    %c6 = arith.constant 6 : index
    %c0_82 = arith.constant 0 : index
    %c0_83 = arith.constant 0 : index
    %200 = vector.load %arg13[%c0_81, %c6, %c0_82, %c0_83] : memref<1x8x16x8xf32, #tpu.memory_space<vmem>>, vector<1x1x16x8xf32>
    %201 = vector.shape_cast %200 : vector<1x1x16x8xf32> to vector<16x8xf32>
    %202 = vector.shape_cast %199 : vector<16x8xf32> to vector<1x1x16x8xf32>
    tpu.vector_store %arg13[%c0_81, %c6, %c0_82, %c0_83], %202 {strides = array<i32>} : memref<1x8x16x8xf32, #tpu.memory_space<vmem>>, vector<1x1x16x8xf32>,
    %203 = vector.extract_strided_slice %31 {offsets = [112, 0], sizes = [16, 24], strides = [1, 1]} : vector<128x24xf32> to vector<16x24xf32>
    %204 = vector.extract_strided_slice %203 {offsets = [0, 0], sizes = [16, 16], strides = [1, 1]} : vector<16x24xf32> to vector<16x16xf32>
    %cst_84 = arith.constant dense<0.000000e+00> : vector<16x16xf32>
    %205 = tpu.matmul %199, %32, %cst_84 {dimension_numbers = #tpu.dot_dimension_numbers<[1], [0], [0], [1], [0, 0, 1, 1], [], []>} : vector<16x8xf32>, vector<8x16xf32>, vector<16x16xf32> -> vector<16x16xf32>
    %206 = arith.addf %204, %205 : vector<16x16xf32>
    %207 = arith.negf %206 : vector<16x16xf32>
    %208 = math.exp %207 : vector<16x16xf32>
    %cst_85 = arith.constant 1.000000e+00 : f32
    %209 = vector.broadcast %cst_85 : f32 to vector<16x16xf32>
    %210 = arith.addf %209, %208 : vector<16x16xf32>
    %211 = arith.divf %209, %210 : vector<16x16xf32>
    %212 = vector.extract_strided_slice %211 {offsets = [0, 0], sizes = [16, 8], strides = [1, 1]} : vector<16x16xf32> to vector<16x8xf32>
    %213 = vector.extract_strided_slice %211 {offsets = [0, 8], sizes = [16, 8], strides = [1, 1]} : vector<16x16xf32> to vector<16x8xf32>
    %214 = vector.extract_strided_slice %203 {offsets = [0, 16], sizes = [16, 8], strides = [1, 1]} : vector<16x24xf32> to vector<16x8xf32>
    %215 = arith.mulf %199, %213 : vector<16x8xf32>
    %cst_86 = arith.constant dense<0.000000e+00> : vector<16x8xf32>
    %216 = tpu.matmul %215, %33, %cst_86 {dimension_numbers = #tpu.dot_dimension_numbers<[1], [0], [0], [1], [0, 0, 1, 1], [], []>} : vector<16x8xf32>, vector<8x8xf32>, vector<16x8xf32> -> vector<16x8xf32>
    %217 = arith.addf %214, %216 : vector<16x8xf32>
    %218 = math.tanh %217 : vector<16x8xf32>
    %219 = arith.mulf %212, %199 : vector<16x8xf32>
    %cst_87 = arith.constant 1.000000e+00 : f32
    %220 = vector.broadcast %cst_87 : f32 to vector<16x8xf32>
    %221 = arith.subf %220, %212 : vector<16x8xf32>
    %222 = arith.mulf %221, %218 : vector<16x8xf32>
    %223 = arith.addf %219, %222 : vector<16x8xf32>
    %c0_88 = arith.constant 0 : index
    %c7 = arith.constant 7 : index
    %c0_89 = arith.constant 0 : index
    %c0_90 = arith.constant 0 : index
    %224 = vector.load %arg13[%c0_88, %c7, %c0_89, %c0_90] : memref<1x8x16x8xf32, #tpu.memory_space<vmem>>, vector<1x1x16x8xf32>
    %225 = vector.shape_cast %224 : vector<1x1x16x8xf32> to vector<16x8xf32>
    %226 = vector.shape_cast %223 : vector<16x8xf32> to vector<1x1x16x8xf32>
    tpu.vector_store %arg13[%c0_88, %c7, %c0_89, %c0_90], %226 {strides = array<i32>} : memref<1x8x16x8xf32, #tpu.memory_space<vmem>>, vector<1x1x16x8xf32>,
    return
  }
  func.func @transform_0(%arg0: i32) -> (i32, i32, i32) {
    %c0_i32 = arith.constant 0 : i32
    %c0_i32_0 = arith.constant 0 : i32
    %c0_i32_1 = arith.constant 0 : i32
    return %arg0, %c0_i32, %c0_i32_0 : i32, i32, i32
  }
  func.func @transform_1(%arg0: i32) -> (i32, i32, i32) {
    %c0_i32 = arith.constant 0 : i32
    %c0_i32_0 = arith.constant 0 : i32
    %c0_i32_1 = arith.constant 0 : i32
    return %arg0, %c0_i32, %c0_i32_0 : i32, i32, i32
  }
  func.func @transform_2(%arg0: i32) -> (i32, i32) {
    %c0_i32 = arith.constant 0 : i32
    %c0_i32_0 = arith.constant 0 : i32
    %c0_i32_1 = arith.constant 0 : i32
    return %c0_i32, %c0_i32_0 : i32, i32
  }
  func.func @transform_3(%arg0: i32) -> (i32, i32) {
    %c0_i32 = arith.constant 0 : i32
    %c0_i32_0 = arith.constant 0 : i32
    %c0_i32_1 = arith.constant 0 : i32
    return %c0_i32, %c0_i32_0 : i32, i32
  }
  func.func @transform_4(%arg0: i32) -> (i32, i32) {
    %c0_i32 = arith.constant 0 : i32
    %c0_i32_0 = arith.constant 0 : i32
    %c0_i32_1 = arith.constant 0 : i32
    return %c0_i32, %c0_i32_0 : i32, i32
  }
  func.func @transform_5(%arg0: i32) -> (i32, i32) {
    %c0_i32 = arith.constant 0 : i32
    %c0_i32_0 = arith.constant 0 : i32
    %c0_i32_1 = arith.constant 0 : i32
    return %c0_i32, %c0_i32_0 : i32, i32
  }
  func.func @transform_6(%arg0: i32) -> (i32, i32) {
    %c0_i32 = arith.constant 0 : i32
    %c0_i32_0 = arith.constant 0 : i32
    %c0_i32_1 = arith.constant 0 : i32
    return %c0_i32, %c0_i32_0 : i32, i32
  }
  func.func @transform_7(%arg0: i32) -> (i32, i32) {
    %c0_i32 = arith.constant 0 : i32
    %c0_i32_0 = arith.constant 0 : i32
    %c0_i32_1 = arith.constant 0 : i32
    return %c0_i32, %c0_i32_0 : i32, i32
  }
  func.func @transform_8(%arg0: i32) -> (i32, i32) {
    %c0_i32 = arith.constant 0 : i32
    %c0_i32_0 = arith.constant 0 : i32
    %c0_i32_1 = arith.constant 0 : i32
    return %c0_i32, %c0_i32_0 : i32, i32
  }
  func.func @transform_9(%arg0: i32) -> (i32, i32) {
    %c0_i32 = arith.constant 0 : i32
    %c0_i32_0 = arith.constant 0 : i32
    %c0_i32_1 = arith.constant 0 : i32
    return %c0_i32, %c0_i32_0 : i32, i32
  }
  func.func @transform_10(%arg0: i32) -> (i32, i32) {
    %c0_i32 = arith.constant 0 : i32
    %c0_i32_0 = arith.constant 0 : i32
    %c0_i32_1 = arith.constant 0 : i32
    return %c0_i32, %c0_i32_0 : i32, i32
  }
  func.func @transform_11(%arg0: i32) -> (i32, i32) {
    %c0_i32 = arith.constant 0 : i32
    %c0_i32_0 = arith.constant 0 : i32
    %c0_i32_1 = arith.constant 0 : i32
    return %c0_i32, %c0_i32_0 : i32, i32
  }
  func.func @transform_12(%arg0: i32) -> (i32, i32, i32, i32) {
    %c0_i32 = arith.constant 0 : i32
    %c0_i32_0 = arith.constant 0 : i32
    %c0_i32_1 = arith.constant 0 : i32
    %c0_i32_2 = arith.constant 0 : i32
    return %arg0, %c0_i32, %c0_i32_0, %c0_i32_1 : i32, i32, i32, i32
  }
}

</mosaic_0001>

<bundles_post_ra>
// kernel: tpu_custom_call.1
= control target key start
LH: loop header
LB: loop body
LE: loop exit
PB: predicated region body
PF: predicated region fallthrough
CT: control target
= control target key end

     0   :  { %s4361_s21 = smov 0   ;;  %s4827_s0 = inlined_call_operand.vmem [shape: f32[2,128,4], index: 0, kind: input, shape index: {}]   ;;  %s4828_s1 = inlined_call_operand.vmem [shape: f32[2,128,128], index: 1, kind: input, shape index: {}]   ;;  %s4829_s2 = inlined_call_operand.vmem [shape: f32[4,8], index: 2, kind: input, shape index: {}]   ;;  %s4830_s3 = inlined_call_operand.vmem [shape: f32[1,8], index: 3, kind: input, shape index: {}]   ;;  %s4831_s4 = inlined_call_operand.vmem [shape: f32[8,96], index: 4, kind: input, shape index: {}]   ;;  %s4832_s5 = inlined_call_operand.vmem [shape: f32[1,96], index: 5, kind: input, shape index: {}]   ;;  %s4833_s6 = inlined_call_operand.vmem [shape: f32[96,24], index: 6, kind: input, shape index: {}]   ;;  %s4834_s7 = inlined_call_operand.vmem [shape: f32[1,24], index: 7, kind: input, shape index: {}]   ;;  %s4835_s8 = inlined_call_operand.vmem [shape: f32[24,24], index: 8, kind: input, shape index: {}]   ;;  %s4836_s9 = inlined_call_operand.vmem [shape: f32[1,24], index: 9, kind: input, shape index: {}]   ;;  %s4837_s10 = inlined_call_operand.vmem [shape: f32[8,16], index: 10, kind: input, shape index: {}]   ;;  %s4838_s11 = inlined_call_operand.vmem [shape: f32[8,8], index: 11, kind: input, shape index: {}]   ;;  %s4839_s12 = inlined_call_operand.vmem [shape: f32[2,8,16,8], index: 12, kind: output, shape index: {}]  }
   0x1 LB: > { %s3424_s22 = sadd.s32 4294967295, %s4290_s21   ;;  %p3428_p0 = scmp.ge.s32.totalorder %s4290_s21, 1  ;;  %s4290_s21 = sphi %s4361_s21, %s22_s21  }
   0x2   : > { %p372_p1 = scmp.lt.s32.totalorder %s4290_s21, 3 }
   0x4   : > { %p373_p2 = pnand %p3428_p0, %p372_p1 }
   0x5   : > { %v466_v0 = vld [vmem:[%s4829_s2] sm:$0xf] (!%p373_p2)  ;;  %vm523_vm0 = vcmask (!%p373_p2), 1043456   ;;  %p419_p3 = scmp.lt.s32.totalorder (!%p373_p2), %s3424_s22, 1  ;;  %vm474_vm1 = vcmask (!%p373_p2), 31744   ;;  %vm689_vm2 = vcmask (!%p373_p2), 64512  }
   0x6   : > { %376 = sbr.rel (%p373_p2) target bundleno = 7734 (0x1e36), region = 68  ;;  %3762 = vmatprep.subr.msk.mxu0 (!%p373_p2), %vm523_vm0, %v466_v0  ;;  %v688_v17 = vld [vmem:[%s4831_s4] sm:$0xff] (!%p373_p2)  ;;  %vm1063_vm3 = vcmask (!%p373_p2), 785408   ;;  %vm1435_vm4 = vcmask (!%p373_p2), 195584   ;;  %s4293_s29 = smov (!%p373_p2), 120  }
   0x7   : > { %3763 = vmatpush3.msk.msra.mxu0 (!%p373_p2), %vm523_vm0, %v466_v0  ;;  %3788 = vmatprep.subr.mxu1 (!%p373_p2), %v688_v17  ;;  %v3435_v18 = vld [vmem:[%s4830_s3] ss:$0 sm:$0xff] (!%p373_p2)  ;;  %s4294_s30 = smov (!%p373_p2), 16  }
   0x8   : > { %3789 = vmatpush3.msra.mxu1 (!%p373_p2), %v688_v17  ;;  %v1060_v17 = vld [vmem:[%s4833_s6 + $0x48] sm:$0xff] (!%p373_p2) }
   0xd   : > { %s4841_s22 = smov (!%p419_p3, %s3424_s22), 1 }
   0xe   : > { %s4372_s25 = sshll.u32 %s4841_s22, 7 }
   0xf   : > { %s4378_s28 = scalar_lea.vmem %s4827_s0, %s4372_s25  ;;  %s4438_s17 = scalar_lea.vmem %s4828_s1, %s4372_s25 }
  0x10   : > { %v434_v1 = vld [vmem:[%s4378_s28] sm:$0xff]  ;;  %v435_v2 = vld [vmem:[%s4378_s28 + $0x8] sm:$0xff]  ;;  %v436_v3 = vld [vmem:[%s4378_s28 + $0x10] sm:$0xff]  ;;  %s4670_s15 = scalar_lea.vmem %s4839_s12, %s4372_s25 }
  0x11   : > { %3764 = vmatprep.mubr.msk.f32.mxu0 %vm474_vm1, %v434_v1  ;;  %v437_v4 = vld [vmem:[%s4378_s28 + $0x18] sm:$0xff]  ;;  %v438_v5 = vld [vmem:[%s4378_s28 + $0x20] sm:$0xff]  ;;  %v439_v6 = vld [vmem:[%s4378_s28 + $0x28] sm:$0xff] }
  0x12   : > { %3765 = vmatmul.mubr.msk.f32.vlgmr.msra.gmra.mrb[0].mxu0 %vm474_vm1, %v435_v2  ;;  %v440_v7 = vld [vmem:[%s4378_s28 + $0x30] sm:$0xff]  ;;  %v441_v8 = vld [vmem:[%s4378_s28 + $0x38] sm:$0xff]  ;;  %v442_v9 = vld [vmem:[%s4378_s28 + $0x40] sm:$0xff] }
  0x13   : > { %3767 = vmatprep.mubr.msk.f32.mxu0 %vm474_vm1, %v436_v3  ;;  %v443_v10 = vld [vmem:[%s4378_s28 + $0x48] sm:$0xff]  ;;  %v444_v11 = vld [vmem:[%s4378_s28 + $0x50] sm:$0xff]  ;;  %v445_v12 = vld [vmem:[%s4378_s28 + $0x58] sm:$0xff] }
  0x14   : > { %v446_v13 = vld [vmem:[%s4378_s28 + $0x60] sm:$0xff]  ;;  %v447_v14 = vld [vmem:[%s4378_s28 + $0x68] sm:$0xff]  ;;  %v448_v15 = vld [vmem:[%s4378_s28 + $0x70] sm:$0xff] }
  0x15   : > { %v449_v16 = vld [vmem:[%s4378_s28 + $0x78] sm:$0xff]  ;;  %v4441_v3 = vld [vmem:[%s4438_s17] sm:$0xff] }
  0x16   : > { %3768 = vmatmul.mubr.msk.f32.gmra.mrb[2].mxu0 %vm474_vm1, %v437_v4  ;;  %v1051_v4 = vld [vmem:[%s4833_s6] sm:$0xff] }
  0x17   : > { %3770 = vmatprep.mubr.msk.f32.mxu0 %vm474_vm1, %v438_v5  ;;  %v1052_v5 = vld [vmem:[%s4833_s6 + $0x8] sm:$0xff] }
  0x1a   : > { %3771 = vmatmul.mubr.msk.f32.gmra.mrb[4].mxu0 %vm474_vm1, %v439_v6  ;;  %v1053_v6 = vld [vmem:[%s4833_s6 + $0x10] sm:$0xff] }
  0x1b   : > { %3773 = vmatprep.mubr.msk.f32.mxu0 %vm474_vm1, %v440_v7  ;;  %v4116_v7 = vpack.c.bf16 %v1052_v5, %v1051_v4 }
  0x1d   : > { %4117 = vmatprep.subr.bf16.mxu1 %v4116_v7 }
  0x1e   : > { %3774 = vmatmul.mubr.msk.f32.gmra.mrb[6].mxu0 %vm474_vm1, %v441_v8  ;;  %v1054_v8 = vld [vmem:[%s4833_s6 + $0x18] sm:$0xff] }
  0x1f   : > { %3776 = vmatprep.mubr.msk.f32.mxu0 %vm474_vm1, %v442_v9  ;;  %v4120_v9 = vpack.c.bf16 %v1054_v8, %v1053_v6 }
  0x22   : > { %3777 = vmatmul.mubr.msk.f32.gmra.mrb[8].mxu0 %vm474_vm1, %v443_v10  ;;  %v1055_v10 = vld [vmem:[%s4833_s6 + $0x20] sm:$0xff] }
  0x23   : > { %3779 = vmatprep.mubr.msk.f32.mxu0 %vm474_vm1, %v444_v11  ;;  %v1056_v11 = vld [vmem:[%s4833_s6 + $0x28] sm:$0xff] }
  0x26   : > { %3780 = vmatmul.mubr.msk.f32.gmra.mrb[10].mxu0 %vm474_vm1, %v445_v12  ;;  %v4124_v12 = vpack.c.bf16 %v1056_v11, %v1055_v10 }
  0x27   : > { %3782 = vmatprep.mubr.msk.f32.mxu0 %vm474_vm1, %v446_v13  ;;  %v1057_v13 = vld [vmem:[%s4833_s6 + $0x30] sm:$0xff] }
  0x2a   : > { %3783 = vmatmul.mubr.msk.f32.gmra.mrb[12].mxu0 %vm474_vm1, %v447_v14  ;;  %v1058_v14 = vld [vmem:[%s4833_s6 + $0x38] sm:$0xff] }
  0x2b   : > { %3785 = vmatprep.mubr.msk.f32.mxu0 %vm474_vm1, %v448_v15  ;;  %v4128_v15 = vpack.c.bf16 %v1058_v14, %v1057_v13 }
  0x2e   : > { %3786 = vmatmul.mubr.msk.f32.gmra.mrb[14].mxu0 %vm474_vm1, %v449_v16  ;;  %v1059_v16 = vld [vmem:[%s4833_s6 + $0x40] sm:$0xff] }
  0x2f   : > { %3846 = vmatprep.mubr.f32.mxu0 %v4441_v3 }
  0xe5   : > { %v3766_v19 = vpop.f32.mrb[0].mxu0 }
  0xe6   : > { %v599_v20 = vadd.f32 %v3766_v19, %v3435_v18  ;;  %v593_v21 = vpop.f32.mrb[1].mxu0 }
  0xe7   : > { %v594_v22 = vadd.f32 %v3435_v18, %v593_v21 }
  0xe8   : > { %v673_v25 = vmax.f32 %v599_v20, 0.0 }
  0xe9   : > { %v672_v23 = vmax.f32 %v594_v22, 0.0  ;;  %v3769_v24 = vpop.f32.mrb[2].mxu0 }
  0xea   : > { %v609_v26 = vadd.f32 %v3769_v24, %v3435_v18  ;;  %v603_v27 = vpop.f32.mrb[3].mxu0 }
  0xeb   : > { %v604_v28 = vadd.f32 %v3435_v18, %v603_v27  ;;  %3790 = vmatprep.mubr.msk.f32.mxu1 %vm689_vm2, %v672_v23 }
  0xec   : > { %3791 = vmatmul.mubr.msk.f32.vlgmr.msra.gmra.mrb[0].mxu1 %vm689_vm2, %v673_v25  ;;  %v675_v31 = vmax.f32 %v609_v26, 0.0 }
  0xed   : > { %v674_v29 = vmax.f32 %v604_v28, 0.0  ;;  %v3772_v30 = vpop.f32.mrb[4].mxu0  ;;  %4119 = vmatpush3.bf16.msra.mxu1 %v4116_v7 }
  0xee   : > { %v619_v32 = vadd.f32 %v3772_v30, %v3435_v18  ;;  %v613_v33 = vpop.f32.mrb[5].mxu0  ;;  %4121 = vmatprep.subr.bf16.mxu1 %v4120_v9 }
  0xef   : > { %v614_v34 = vadd.f32 %v3435_v18, %v613_v33  ;;  %3793 = vmatprep.mubr.msk.f32.mxu1 %vm689_vm2, %v674_v29 }
  0xf0   : > { %3794 = vmatmul.mubr.msk.f32.gmra.mrb[2].mxu1 %vm689_vm2, %v675_v31  ;;  %v677_v37 = vmax.f32 %v619_v32, 0.0 }
  0xf1   : > { %v676_v35 = vmax.f32 %v614_v34, 0.0  ;;  %v3775_v36 = vpop.f32.mrb[6].mxu0  ;;  %4123 = vmatpush3.bf16.msra.mxu1 %v4120_v9 }
  0xf2   : > { %v629_v38 = vadd.f32 %v3775_v36, %v3435_v18  ;;  %v623_v39 = vpop.f32.mrb[7].mxu0  ;;  %4125 = vmatprep.subr.bf16.mxu1 %v4124_v12 }
  0xf3   : > { %v624_v40 = vadd.f32 %v3435_v18, %v623_v39  ;;  %3796 = vmatprep.mubr.msk.f32.mxu1 %vm689_vm2, %v676_v35 }
  0xf4   : > { %3797 = vmatmul.mubr.msk.f32.gmra.mrb[4].mxu1 %vm689_vm2, %v677_v37  ;;  %v679_v43 = vmax.f32 %v629_v38, 0.0 }
  0xf5   : > { %v678_v41 = vmax.f32 %v624_v40, 0.0  ;;  %v3778_v42 = vpop.f32.mrb[8].mxu0  ;;  %4127 = vmatpush3.bf16.msra.mxu1 %v4124_v12 }
  0xf6   : > { %v639_v44 = vadd.f32 %v3778_v42, %v3435_v18  ;;  %v633_v45 = vpop.f32.mrb[9].mxu0  ;;  %4129 = vmatprep.subr.bf16.mxu1 %v4128_v15 }
  0xf7   : > { %v634_v46 = vadd.f32 %v3435_v18, %v633_v45  ;;  %3799 = vmatprep.mubr.msk.f32.mxu1 %vm689_vm2, %v678_v41  ;;  %v4483_v45 = vld [vmem:[%s4438_s17 + $0x18] sm:$0xff] }
  0xf8   : > { %3800 = vmatmul.mubr.msk.f32.gmra.mrb[6].mxu1 %vm689_vm2, %v679_v43  ;;  %v681_v49 = vmax.f32 %v639_v44, 0.0  ;;  %v4475_v43 = vld [vmem:[%s4438_s17 + $0x8] sm:$0xff]  ;;  %v4478_v44 = vld [vmem:[%s4438_s17 + $0x10] sm:$0xff] }
  0xf9   : > { %v680_v47 = vmax.f32 %v634_v46, 0.0  ;;  %v3781_v48 = vpop.f32.mrb[10].mxu0  ;;  %4131 = vmatpush3.bf16.msra.mxu1 %v4128_v15  ;;  %v4486_v46 = vld [vmem:[%s4438_s17 + $0x20] sm:$0xff] }
  0xfa   : > { %v649_v50 = vadd.f32 %v3781_v48, %v3435_v18  ;;  %v643_v51 = vpop.f32.mrb[11].mxu0  ;;  %v4494_v48 = vld [vmem:[%s4438_s17 + $0x30] sm:$0xff] }
  0xfb   : > { %v644_v52 = vadd.f32 %v3435_v18, %v643_v51  ;;  %3802 = vmatprep.mubr.msk.f32.mxu1 %vm689_vm2, %v680_v47  ;;  %v4491_v47 = vld [vmem:[%s4438_s17 + $0x28] sm:$0xff] }
  0xfc   : > { %3803 = vmatmul.mubr.msk.f32.gmra.mrb[8].mxu1 %vm689_vm2, %v681_v49  ;;  %v683_v55 = vmax.f32 %v649_v50, 0.0  ;;  %v4499_v49 = vld [vmem:[%s4438_s17 + $0x38] sm:$0xff]  ;;  %v4502_v50 = vld [vmem:[%s4438_s17 + $0x40] sm:$0xff]  ;;  %v4507_v51 = vld [vmem:[%s4438_s17 + $0x48] sm:$0xff] }
  0xfd   : > { %v682_v53 = vmax.f32 %v644_v52, 0.0  ;;  %v3784_v54 = vpop.f32.mrb[12].mxu0  ;;  %v4510_v52 = vld [vmem:[%s4438_s17 + $0x50] sm:$0xff] }
  0xfe   : > { %v659_v56 = vadd.f32 %v3784_v54, %v3435_v18  ;;  %v653_v57 = vpop.f32.mrb[13].mxu0  ;;  %v4518_v54 = vld [vmem:[%s4438_s17 + $0x60] sm:$0xff] }
  0xff   : > { %v654_v58 = vadd.f32 %v3435_v18, %v653_v57  ;;  %3805 = vmatprep.mubr.msk.f32.mxu1 %vm689_vm2, %v682_v53  ;;  %v4515_v53 = vld [vmem:[%s4438_s17 + $0x58] sm:$0xff] }
 0x100   : > { %3806 = vmatmul.mubr.msk.f32.gmra.mrb[10].mxu1 %vm689_vm2, %v683_v55  ;;  %v685_v61 = vmax.f32 %v659_v56, 0.0  ;;  %v4523_v55 = vld [vmem:[%s4438_s17 + $0x68] sm:$0xff]  ;;  %v4526_v56 = vld [vmem:[%s4438_s17 + $0x70] sm:$0xff]  ;;  %v4531_v57 = vld [vmem:[%s4438_s17 + $0x78] sm:$0xff]  ;;  %s4295_s17 = smov 112  }
 0x101   : > { %v684_v59 = vmax.f32 %v654_v58, 0.0  ;;  %v3787_v60 = vpop.f32.mrb[14].mxu0  ;;  %v1061_v58 = vld [vmem:[%s4833_s6 + $0x50] sm:$0xff] }
 0x102   : > { %v669_v62 = vadd.f32 %v3787_v60, %v3435_v18  ;;  %v663_v63 = vpop.f32.mrb[15].mxu0 }
 0x103   : > { %v664_v0 = vadd.f32 %v3435_v18, %v663_v63  ;;  %3808 = vmatprep.mubr.msk.f32.mxu1 %vm689_vm2, %v684_v59  ;;  %v4132_v18 = vpack.c.bf16 %v1060_v17, %v1059_v16  ;;  %v1062_v59 = vld [vmem:[%s4833_s6 + $0x58] sm:$0xff] }
 0x104   : > { %3809 = vmatmul.mubr.msk.f32.gmra.mrb[12].mxu1 %vm689_vm2, %v685_v61  ;;  %v687_v2 = vmax.f32 %v669_v62, 0.0  ;;  %v4136_v60 = vpack.c.bf16 %v1062_v59, %v1061_v58  ;;  %v3469_v61 = vld [vmem:[%s4832_s5] ss:$0 sm:$0xff] }
 0x105   : > { %v686_v1 = vmax.f32 %v664_v0, 0.0  ;;  %4133 = vmatprep.subr.bf16.mxu1 %v4132_v18 }
 0x106   : > { %4135 = vmatpush3.bf16.msra.mxu1 %v4132_v18 }
 0x107   : > { %3811 = vmatprep.mubr.msk.f32.mxu1 %vm689_vm2, %v686_v1  ;;  %4137 = vmatprep.subr.bf16.mxu1 %v4136_v60 }
 0x108   : > { %3812 = vmatmul.mubr.msk.f32.gmra.mrb[14].mxu1 %vm689_vm2, %v687_v2 }
 0x10a   : > { %4139 = vmatpush3.bf16.msra.mxu1 %v4136_v60 }
 0x1bf   : > { %v3792_v19 = vpop.f32.mrb[0].mxu1 }
 0x1c0   : > { %v804_v20 = vpop.f32.mrb[1].mxu1 }
 0x1c1   : > { %v4084_v21 = vpack.c.bf16 %v3792_v19, %v804_v20 }
 0x1c3   : > { %v3795_v22 = vpop.f32.mrb[2].mxu1  ;;  %4085 = vmatprep.subr.bf16.mxu0 %v4084_v21 }
 0x1c4   : > { %v814_v23 = vpop.f32.mrb[3].mxu1  ;;  %4087 = vmatpush3.bf16.msra.mxu0 %v4084_v21 }
 0x1c5   : > { %v4088_v24 = vpack.c.bf16 %v3795_v22, %v814_v23 }
 0x1c7   : > { %v3798_v25 = vpop.f32.mrb[4].mxu1  ;;  %4089 = vmatprep.subr.bf16.mxu0 %v4088_v24 }
 0x1c8   : > { %v824_v26 = vpop.f32.mrb[5].mxu1  ;;  %4091 = vmatpush3.bf16.msra.mxu0 %v4088_v24 }
 0x1c9   : > { %v4092_v27 = vpack.c.bf16 %v3798_v25, %v824_v26 }
 0x1cb   : > { %v3801_v28 = vpop.f32.mrb[6].mxu1  ;;  %4093 = vmatprep.subr.bf16.mxu0 %v4092_v27 }
 0x1cc   : > { %v834_v29 = vpop.f32.mrb[7].mxu1  ;;  %4095 = vmatpush3.bf16.msra.mxu0 %v4092_v27 }
 0x1cd   : > { %v4096_v30 = vpack.c.bf16 %v3801_v28, %v834_v29 }
 0x1cf   : > { %v3804_v31 = vpop.f32.mrb[8].mxu1  ;;  %4097 = vmatprep.subr.bf16.mxu0 %v4096_v30 }
 0x1d0   : > { %v844_v32 = vpop.f32.mrb[9].mxu1  ;;  %4099 = vmatpush3.bf16.msra.mxu0 %v4096_v30 }
 0x1d1   : > { %v4100_v33 = vpack.c.bf16 %v3804_v31, %v844_v32 }
 0x1d3   : > { %v3807_v34 = vpop.f32.mrb[10].mxu1  ;;  %4101 = vmatprep.subr.bf16.mxu0 %v4100_v33 }
 0x1d4   : > { %v854_v35 = vpop.f32.mrb[11].mxu1  ;;  %4103 = vmatpush3.bf16.msra.mxu0 %v4100_v33 }
 0x1d5   : > { %v4104_v36 = vpack.c.bf16 %v3807_v34, %v854_v35 }
 0x1d7   : > { %v3810_v37 = vpop.f32.mrb[12].mxu1  ;;  %4105 = vmatprep.subr.bf16.mxu0 %v4104_v36 }
 0x1d8   : > { %v864_v38 = vpop.f32.mrb[13].mxu1  ;;  %4107 = vmatpush3.bf16.msra.mxu0 %v4104_v36 }
 0x1d9   : > { %v4108_v39 = vpack.c.bf16 %v3810_v37, %v864_v38 }
 0x1db   : > { %v3813_v40 = vpop.f32.mrb[14].mxu1  ;;  %4109 = vmatprep.subr.bf16.mxu0 %v4108_v39 }
 0x1dc   : > { %v874_v41 = vpop.f32.mrb[15].mxu1  ;;  %4111 = vmatpush3.bf16.msra.mxu0 %v4108_v39 }
 0x1dd   : > { %v4112_v42 = vpack.c.bf16 %v3813_v40, %v874_v41 }
 0x1df   : > { %4113 = vmatprep.subr.bf16.mxu0 %v4112_v42 }
 0x1e0   : > { %4115 = vmatpush3.bf16.msra.mxu0 %v4112_v42 }
 0x1e3   : > { %3847 = vmatmul.mubr.f32.vlgmr.msra.gmra.mrb[16].mxu0 %v4475_v43 }
 0x1e4   : > { %3849 = vmatprep.mubr.f32.mxu0 %v4478_v44 }
 0x1e7   : > { %3850 = vmatmul.mubr.f32.gmra.mrb[18].mxu0 %v4483_v45 }
 0x1e8   : > { %3852 = vmatprep.mubr.f32.mxu0 %v4486_v46 }
 0x1eb   : > { %3853 = vmatmul.mubr.f32.gmra.mrb[20].mxu0 %v4491_v47 }
 0x1ec   : > { %3855 = vmatprep.mubr.f32.mxu0 %v4494_v48 }
 0x1ef   : > { %3856 = vmatmul.mubr.f32.gmra.mrb[22].mxu0 %v4499_v49 }
 0x1f0   : > { %3858 = vmatprep.mubr.f32.mxu0 %v4502_v50 }
 0x1f3   : > { %3859 = vmatmul.mubr.f32.gmra.mrb[24].mxu0 %v4507_v51 }
 0x1f4   : > { %3861 = vmatprep.mubr.f32.mxu0 %v4510_v52 }
 0x1f7   : > { %3862 = vmatmul.mubr.f32.gmra.mrb[26].mxu0 %v4515_v53 }
 0x1f8   : > { %3864 = vmatprep.mubr.f32.mxu0 %v4518_v54 }
 0x1fb   : > { %3865 = vmatmul.mubr.f32.gmra.mrb[28].mxu0 %v4523_v55 }
 0x1fc   : > { %3867 = vmatprep.mubr.f32.mxu0 %v4526_v56 }
 0x1ff   : > { %3868 = vmatmul.mubr.f32.gmra.mrb[30].mxu0 %v4531_v57 }
 0x200   : > { %3950 = vmatprep.mubr.f32.mxu0 %v4441_v3 }
 0x2b6   : > { %v3848_v62 = vpop.f32.mrb[16].mxu0 }
 0x2b7   : > { %v962_v63 = vadd.f32 %v3848_v62, %v3469_v61  ;;  %v956_v0 = vpop.f32.mrb[17].mxu0  ;;  %v1425_v62 = vld [vmem:[%s4835_s8] sm:$0xff] }
 0x2b8   : > { %v957_v1 = vadd.f32 %v3469_v61, %v956_v0 }
 0x2b9   : > { %v1036_v4 = vmax.f32 %v962_v63, 0.0  ;;  %v1426_v63 = vld [vmem:[%s4835_s8 + $0x8] sm:$0xff] }
 0x2ba   : > { %v1035_v2 = vmax.f32 %v957_v1, 0.0  ;;  %v3851_v3 = vpop.f32.mrb[18].mxu0  ;;  %v4172_v0 = vpack.c.bf16 %v1426_v63, %v1425_v62 }
 0x2bb   : > { %v972_v5 = vadd.f32 %v3851_v3, %v3469_v61  ;;  %v966_v6 = vpop.f32.mrb[19].mxu0 }
 0x2bc   : > { %v967_v7 = vadd.f32 %v3469_v61, %v966_v6  ;;  %3894 = vmatprep.mubr.msk.f32.mxu1 %vm1063_vm3, %v1035_v2  ;;  %4173 = vmatprep.subr.bf16.mxu1 %v4172_v0 }
 0x2bd   : > { %3895 = vmatmul.mubr.msk.f32.vlgmr.msra.gmra.mrb[16].mxu1 %vm1063_vm3, %v1036_v4  ;;  %v1038_v10 = vmax.f32 %v972_v5, 0.0 }
 0x2be   : > { %v1037_v8 = vmax.f32 %v967_v7, 0.0  ;;  %v3854_v9 = vpop.f32.mrb[20].mxu0  ;;  %4175 = vmatpush3.bf16.msra.mxu1 %v4172_v0 }
 0x2bf   : > { %v982_v11 = vadd.f32 %v3854_v9, %v3469_v61  ;;  %v976_v12 = vpop.f32.mrb[21].mxu0 }
 0x2c0   : > { %v977_v13 = vadd.f32 %v3469_v61, %v976_v12  ;;  %3897 = vmatprep.mubr.msk.f32.mxu1 %vm1063_vm3, %v1037_v8 }
 0x2c1   : > { %3898 = vmatmul.mubr.msk.f32.gmra.mrb[18].mxu1 %vm1063_vm3, %v1038_v10  ;;  %v1040_v16 = vmax.f32 %v982_v11, 0.0 }
 0x2c2   : > { %v1039_v14 = vmax.f32 %v977_v13, 0.0  ;;  %v3857_v15 = vpop.f32.mrb[22].mxu0 }
 0x2c3   : > { %v992_v17 = vadd.f32 %v3857_v15, %v3469_v61  ;;  %v986_v18 = vpop.f32.mrb[23].mxu0 }
 0x2c4   : > { %v987_v19 = vadd.f32 %v3469_v61, %v986_v18  ;;  %3900 = vmatprep.mubr.msk.f32.mxu1 %vm1063_vm3, %v1039_v14 }
 0x2c5   : > { %3901 = vmatmul.mubr.msk.f32.gmra.mrb[20].mxu1 %vm1063_vm3, %v1040_v16  ;;  %v1042_v22 = vmax.f32 %v992_v17, 0.0 }
 0x2c6   : > { %v1041_v20 = vmax.f32 %v987_v19, 0.0  ;;  %v3860_v21 = vpop.f32.mrb[24].mxu0 }
 0x2c7   : > { %v1002_v23 = vadd.f32 %v3860_v21, %v3469_v61  ;;  %v996_v24 = vpop.f32.mrb[25].mxu0 }
 0x2c8   : > { %v997_v25 = vadd.f32 %v3469_v61, %v996_v24  ;;  %3903 = vmatprep.mubr.msk.f32.mxu1 %vm1063_vm3, %v1041_v20 }
 0x2c9   : > { %3904 = vmatmul.mubr.msk.f32.gmra.mrb[22].mxu1 %vm1063_vm3, %v1042_v22  ;;  %v1044_v28 = vmax.f32 %v1002_v23, 0.0 }
 0x2ca   : > { %v1043_v26 = vmax.f32 %v997_v25, 0.0  ;;  %v3863_v27 = vpop.f32.mrb[26].mxu0  ;;  %v4572_v25 = vld [vmem:[%s4837_s10] sm:$0xff] }
 0x2cb   : > { %v1012_v29 = vadd.f32 %v3863_v27, %v3469_v61  ;;  %v1006_v30 = vpop.f32.mrb[27].mxu0 }
 0x2cc   : > { %v1007_v31 = vadd.f32 %v3469_v61, %v1006_v30  ;;  %3906 = vmatprep.mubr.msk.f32.mxu1 %vm1063_vm3, %v1043_v26 }
 0x2cd   : > { %3907 = vmatmul.mubr.msk.f32.gmra.mrb[24].mxu1 %vm1063_vm3, %v1044_v28  ;;  %v1046_v34 = vmax.f32 %v1012_v29, 0.0 }
 0x2ce   : > { %v1045_v32 = vmax.f32 %v1007_v31, 0.0  ;;  %v3866_v33 = vpop.f32.mrb[28].mxu0 }
 0x2cf   : > { %v1022_v35 = vadd.f32 %v3866_v33, %v3469_v61  ;;  %v1016_v36 = vpop.f32.mrb[29].mxu0 }
 0x2d0   : > { %v1017_v37 = vadd.f32 %v3469_v61, %v1016_v36  ;;  %3909 = vmatprep.mubr.msk.f32.mxu1 %vm1063_vm3, %v1045_v32 }
 0x2d1   : > { %3910 = vmatmul.mubr.msk.f32.gmra.mrb[26].mxu1 %vm1063_vm3, %v1046_v34  ;;  %v1048_v40 = vmax.f32 %v1022_v35, 0.0 }
 0x2d2   : > { %v1047_v38 = vmax.f32 %v1017_v37, 0.0  ;;  %v3869_v39 = vpop.f32.mrb[30].mxu0 }
 0x2d3   : > { %v1032_v41 = vadd.f32 %v3869_v39, %v3469_v61  ;;  %v1026_v42 = vpop.f32.mrb[31].mxu0 }
 0x2d4   : > { %v1027_v58 = vadd.f32 %v3469_v61, %v1026_v42  ;;  %3912 = vmatprep.mubr.msk.f32.mxu1 %vm1063_vm3, %v1047_v38  ;;  %v1427_v61 = vld [vmem:[%s4835_s8 + $0x10] sm:$0xff] }
 0x2d5   : > { %3913 = vmatmul.mubr.msk.f32.gmra.mrb[28].mxu1 %vm1063_vm3, %v1048_v40  ;;  %v1050_v60 = vmax.f32 %v1032_v41, 0.0  ;;  %3978 = vmatprep.subr.mxu1 %v1427_v61 }
 0x2d6   : > { %v1049_v59 = vmax.f32 %v1027_v58, 0.0  ;;  %3979 = vmatpush3.msra.mxu1 %v1427_v61 }
 0x2d8   : > { %3915 = vmatprep.mubr.msk.f32.mxu1 %vm1063_vm3, %v1049_v59 }
 0x2d9   : > { %3916 = vmatmul.mubr.msk.f32.gmra.mrb[30].mxu1 %vm1063_vm3, %v1050_v60 }
 0x390   : > { %v3896_v1 = vpop.f32.mrb[16].mxu1 }
 0x391   : > { %v1178_v2 = vpop.f32.mrb[17].mxu1 }
 0x392   : > { %v4140_v3 = vpack.c.bf16 %v3896_v1, %v1178_v2 }
 0x394   : > { %v3899_v4 = vpop.f32.mrb[18].mxu1  ;;  %4141 = vmatprep.subr.bf16.mxu0 %v4140_v3 }
 0x395   : > { %v1188_v5 = vpop.f32.mrb[19].mxu1  ;;  %4143 = vmatpush3.bf16.msra.mxu0 %v4140_v3 }
 0x396   : > { %v4144_v6 = vpack.c.bf16 %v3899_v4, %v1188_v5 }
 0x398   : > { %v3902_v7 = vpop.f32.mrb[20].mxu1  ;;  %4145 = vmatprep.subr.bf16.mxu0 %v4144_v6 }
 0x399   : > { %v1198_v8 = vpop.f32.mrb[21].mxu1  ;;  %4147 = vmatpush3.bf16.msra.mxu0 %v4144_v6 }
 0x39a   : > { %v4148_v9 = vpack.c.bf16 %v3902_v7, %v1198_v8 }
 0x39c   : > { %v3905_v10 = vpop.f32.mrb[22].mxu1  ;;  %4149 = vmatprep.subr.bf16.mxu0 %v4148_v9 }
 0x39d   : > { %v1208_v11 = vpop.f32.mrb[23].mxu1  ;;  %4151 = vmatpush3.bf16.msra.mxu0 %v4148_v9 }
 0x39e   : > { %v4152_v12 = vpack.c.bf16 %v3905_v10, %v1208_v11 }
 0x3a0   : > { %v3908_v13 = vpop.f32.mrb[24].mxu1  ;;  %4153 = vmatprep.subr.bf16.mxu0 %v4152_v12 }
 0x3a1   : > { %v1218_v14 = vpop.f32.mrb[25].mxu1  ;;  %4155 = vmatpush3.bf16.msra.mxu0 %v4152_v12 }
 0x3a2   : > { %v4156_v15 = vpack.c.bf16 %v3908_v13, %v1218_v14  ;;  %v4616_v14 = vld [vmem:[%s4838_s11] sm:$0xff] }
 0x3a3   : > { %4009 = vmatprep.subr.mxu1 %v4616_v14 }
 0x3a4   : > { %v3911_v16 = vpop.f32.mrb[26].mxu1  ;;  %4157 = vmatprep.subr.bf16.mxu0 %v4156_v15 }
 0x3a5   : > { %v1228_v17 = vpop.f32.mrb[27].mxu1  ;;  %4159 = vmatpush3.bf16.msra.mxu0 %v4156_v15  ;;  %v3487_v15 = vld [vmem:[%s4836_s9] ss:$0 sm:$0xff] }
 0x3a6   : > { %v4160_v18 = vpack.c.bf16 %v3911_v16, %v1228_v17 }
 0x3a8   : > { %v3914_v19 = vpop.f32.mrb[28].mxu1  ;;  %4161 = vmatprep.subr.bf16.mxu0 %v4160_v18 }
 0x3a9   : > { %v1238_v20 = vpop.f32.mrb[29].mxu1  ;;  %4163 = vmatpush3.bf16.msra.mxu0 %v4160_v18 }
 0x3aa   : > { %v4164_v21 = vpack.c.bf16 %v3914_v19, %v1238_v20 }
 0x3ac   : > { %v3917_v22 = vpop.f32.mrb[30].mxu1  ;;  %4165 = vmatprep.subr.bf16.mxu0 %v4164_v21 }
 0x3ad   : > { %v1248_v23 = vpop.f32.mrb[31].mxu1  ;;  %4167 = vmatpush3.bf16.msra.mxu0 %v4164_v21 }
 0x3ae   : > { %v4168_v24 = vpack.c.bf16 %v3917_v22, %v1248_v23 }
 0x3b0   : > { %4169 = vmatprep.subr.bf16.mxu0 %v4168_v24 }
 0x3b1   : > { %4171 = vmatpush3.bf16.msra.mxu0 %v4168_v24 }
 0x3b2   : > { %4004 = vmatprep.subr.mxu0 %v4572_v25 }
 0x3b4   : > { %3951 = vmatmul.mubr.f32.vlgmr.msra.gmra.mrb[32].mxu0 %v4475_v43  ;;  %v4292_v43 = vmov 0.0  }
 0x3b5   : > { %3953 = vmatprep.mubr.f32.mxu0 %v4478_v44  ;;  %4005 = vmatpush3.msra.mxu0 %v4572_v25  ;;  %v3486_v44 = vld [vmem:[%s4834_s7] ss:$0 sm:$0xff] }
 0x3b6   : > { %4014 = vmatprep.subr.mxu0 %v4572_v25 }
 0x3b8   : > { %3954 = vmatmul.mubr.f32.gmra.mrb[34].mxu0 %v4483_v45 }
 0x3b9   : > { %3956 = vmatprep.mubr.f32.mxu0 %v4486_v46 }
 0x3bc   : > { %3957 = vmatmul.mubr.f32.gmra.mrb[36].mxu0 %v4491_v47 }
 0x3bd   : > { %3959 = vmatprep.mubr.f32.mxu0 %v4494_v48 }
 0x3c0   : > { %3960 = vmatmul.mubr.f32.gmra.mrb[38].mxu0 %v4499_v49 }
 0x3c1   : > { %3962 = vmatprep.mubr.f32.mxu0 %v4502_v50 }
 0x3c4   : > { %3963 = vmatmul.mubr.f32.gmra.mrb[40].mxu0 %v4507_v51 }
 0x3c5   : > { %3965 = vmatprep.mubr.f32.mxu0 %v4510_v52 }
 0x3c8   : > { %3966 = vmatmul.mubr.f32.gmra.mrb[42].mxu0 %v4515_v53 }
 0x3c9   : > { %3968 = vmatprep.mubr.f32.mxu0 %v4518_v54 }
 0x3cc   : > { %3969 = vmatmul.mubr.f32.gmra.mrb[44].mxu0 %v4523_v55 }
 0x3cd   : > { %3971 = vmatprep.mubr.f32.mxu0 %v4526_v56 }
 0x3d0   : > { %3972 = vmatmul.mubr.f32.gmra.mrb[46].mxu0 %v4531_v57 }
 0x3d1   : > { %4006 = vmatprep.mubr.f32.mxu0 %v4292_v43 }
 0x3d4   : > { %4007 = vmatmul.mubr.f32.vlgmr.msra.gmra.mrb[48].mxu0 %v4292_v43 }
 0x3d5   : > { %4015 = vmatpush3.msra.mxu0 %v4572_v25 }
 0x3d6   : > { %4024 = vmatprep.subr.mxu0 %v4572_v25 }
 0x487   : > { %v3952_v45 = vpop.f32.mrb[32].mxu0 }
 0x488   : > { %v1336_v46 = vadd.f32 %v3952_v45, %v3486_v44  ;;  %v1330_v47 = vpop.f32.mrb[33].mxu0 }
 0x489   : > { %v1331_v48 = vadd.f32 %v3486_v44, %v1330_v47 }
 0x48a   : > { %v1410_v51 = vmax.f32 %v1336_v46, 0.0 }
 0x48b   : > { %v1409_v49 = vmax.f32 %v1331_v48, 0.0  ;;  %v3955_v50 = vpop.f32.mrb[34].mxu0 }
 0x48c   : > { %v1346_v52 = vadd.f32 %v3955_v50, %v3486_v44  ;;  %v1340_v53 = vpop.f32.mrb[35].mxu0 }
 0x48d   : > { %3980 = vmatprep.mubr.msk.f32.mxu1 %vm1435_vm4, %v1409_v49  ;;  %v1341_v54 = vadd.f32 %v3486_v44, %v1340_v53 }
 0x48e   : > { %3981 = vmatmul.mubr.msk.f32.vlgmr.msra.gmra.mrb[32].mxu1 %vm1435_vm4, %v1410_v51  ;;  %v1412_v55 = vmax.f32 %v1346_v52, 0.0 }
 0x48f   : > { %v1411_v56 = vmax.f32 %v1341_v54, 0.0  ;;  %v3958_v57 = vpop.f32.mrb[36].mxu0  ;;  %4010 = vmatpush3.msra.mxu1 %v4616_v14 }
 0x490   : > { %v1356_v26 = vadd.f32 %v3958_v57, %v3486_v44  ;;  %v1350_v27 = vpop.f32.mrb[37].mxu0  ;;  %4019 = vmatprep.subr.mxu1 %v4616_v14 }
 0x491   : > { %v1351_v28 = vadd.f32 %v3486_v44, %v1350_v27  ;;  %3983 = vmatprep.mubr.msk.f32.mxu1 %vm1435_vm4, %v1411_v56 }
 0x492   : > { %v1414_v29 = vmax.f32 %v1356_v26, 0.0  ;;  %3984 = vmatmul.mubr.msk.f32.gmra.mrb[34].mxu1 %vm1435_vm4, %v1412_v55 }
 0x493   : > { %v1413_v30 = vmax.f32 %v1351_v28, 0.0  ;;  %v3961_v31 = vpop.f32.mrb[38].mxu0 }
 0x494   : > { %v1366_v32 = vadd.f32 %v3961_v31, %v3486_v44  ;;  %v1360_v33 = vpop.f32.mrb[39].mxu0 }
 0x495   : > { %v1361_v34 = vadd.f32 %v3486_v44, %v1360_v33  ;;  %3986 = vmatprep.mubr.msk.f32.mxu1 %vm1435_vm4, %v1413_v30 }
 0x496   : > { %v1416_v35 = vmax.f32 %v1366_v32, 0.0  ;;  %3987 = vmatmul.mubr.msk.f32.gmra.mrb[36].mxu1 %vm1435_vm4, %v1414_v29 }
 0x497   : > { %v1415_v36 = vmax.f32 %v1361_v34, 0.0  ;;  %v3964_v37 = vpop.f32.mrb[40].mxu0 }
 0x498   : > { %v1376_v38 = vadd.f32 %v3964_v37, %v3486_v44  ;;  %v1370_v39 = vpop.f32.mrb[41].mxu0 }
 0x499   : > { %v1371_v40 = vadd.f32 %v3486_v44, %v1370_v39  ;;  %3989 = vmatprep.mubr.msk.f32.mxu1 %vm1435_vm4, %v1415_v36 }
 0x49a   : > { %v1418_v41 = vmax.f32 %v1376_v38, 0.0  ;;  %3990 = vmatmul.mubr.msk.f32.gmra.mrb[38].mxu1 %vm1435_vm4, %v1416_v35 }
 0x49b   : > { %v1417_v42 = vmax.f32 %v1371_v40, 0.0  ;;  %v3967_v58 = vpop.f32.mrb[42].mxu0 }
 0x49c   : > { %v1386_v59 = vadd.f32 %v3967_v58, %v3486_v44  ;;  %v1380_v60 = vpop.f32.mrb[43].mxu0 }
 0x49d   : > { %v1381_v62 = vadd.f32 %v3486_v44, %v1380_v60  ;;  %3992 = vmatprep.mubr.msk.f32.mxu1 %vm1435_vm4, %v1417_v42 }
 0x49e   : > { %v1420_v63 = vmax.f32 %v1386_v59, 0.0  ;;  %3993 = vmatmul.mubr.msk.f32.gmra.mrb[40].mxu1 %vm1435_vm4, %v1418_v41 }
 0x49f   : > { %v1419_v0 = vmax.f32 %v1381_v62, 0.0  ;;  %v3970_v61 = vpop.f32.mrb[44].mxu0 }
 0x4a0   : > { %v1396_v1 = vadd.f32 %v3970_v61, %v3486_v44  ;;  %v1390_v2 = vpop.f32.mrb[45].mxu0 }
 0x4a1   : > { %v1391_v3 = vadd.f32 %v3486_v44, %v1390_v2  ;;  %3995 = vmatprep.mubr.msk.f32.mxu1 %vm1435_vm4, %v1419_v0 }
 0x4a2   : > { %v1422_v4 = vmax.f32 %v1396_v1, 0.0  ;;  %3996 = vmatmul.mubr.msk.f32.gmra.mrb[42].mxu1 %vm1435_vm4, %v1420_v63 }
 0x4a3   : > { %v1421_v5 = vmax.f32 %v1391_v3, 0.0  ;;  %v3973_v6 = vpop.f32.mrb[46].mxu0 }
 0x4a4   : > { %v1406_v7 = vadd.f32 %v3973_v6, %v3486_v44  ;;  %v1400_v8 = vpop.f32.mrb[47].mxu0 }
 0x4a5   : > { %v1401_v9 = vadd.f32 %v3486_v44, %v1400_v8  ;;  %3998 = vmatprep.mubr.msk.f32.mxu1 %vm1435_vm4, %v1421_v5 }
 0x4a6   : > { %v1424_v10 = vmax.f32 %v1406_v7, 0.0  ;;  %3999 = vmatmul.mubr.msk.f32.gmra.mrb[44].mxu1 %vm1435_vm4, %v1422_v4 }
 0x4a7   : > { %v1423_v11 = vmax.f32 %v1401_v9, 0.0  ;;  %v4008_v12 = vpop.f32.mrb[48].mxu0 }
 0x4a8   : > { %v1700_v13 = vpop.f32.mrb[49].mxu0 }
 0x4a9   : > { %4001 = vmatprep.mubr.msk.f32.mxu1 %vm1435_vm4, %v1423_v11 }
 0x4aa   : > { %4002 = vmatmul.mubr.msk.f32.gmra.mrb[46].mxu1 %vm1435_vm4, %v1424_v10 }
 0x561   : > { %v3982_v16 = vpop.f32.mrb[32].mxu1 }
 0x562   : > { %v4624_v17 = vadd.f32 %v3982_v16, %v3487_v15  ;;  %v1550_v18 = vpop.f32.mrb[33].mxu1 }
 0x563   : > { %v1551_v19 = vadd.f32 %v3487_v15, %v1550_v18 }
 0x564   : > { %v1710_v20 = vadd.f32 %v4008_v12, %v4624_v17 }
 0x565   : > { %v1709_v21 = vadd.f32 %v1700_v13, %v1551_v19  ;;  %v3985_v46 = vpop.f32.mrb[34].mxu1 }
 0x566   : > { %v3505_v22 = vmul.f32 -1.442695, %v1710_v20  ;;  %v4627_v47 = vadd.f32 %v3985_v46, %v3487_v15  ;;  %v1560_v48 = vpop.f32.mrb[35].mxu1 }
 0x567   : > { %v3504_v23 = vmul.f32 -1.442695, %v1709_v21  ;;  %v4629_v49 = vadd.f32 %v3487_v15, %v1560_v48 }
 0x568   : > { %4188 = vpow2.f32 %v3505_v22 }
 0x569   : > { %4190 = vpow2.f32 %v3504_v23  ;;  %v3988_v50 = vpop.f32.mrb[36].mxu1 }
 0x56a   : > { %v4631_v51 = vadd.f32 %v3988_v50, %v3487_v15  ;;  %v1570_v52 = vpop.f32.mrb[37].mxu1 }
 0x56b   : > { %v4633_v53 = vadd.f32 %v3487_v15, %v1570_v52 }
 0x56d   : > { %v3991_v54 = vpop.f32.mrb[38].mxu1 }
 0x56e   : > { %v4635_v55 = vadd.f32 %v3991_v54, %v3487_v15  ;;  %v1580_v56 = vpop.f32.mrb[39].mxu1 }
 0x56f   : > { %v4637_v26 = vadd.f32 %v3487_v15, %v1580_v56 }
 0x571   : > { %v3994_v27 = vpop.f32.mrb[40].mxu1 }
 0x572   : > { %v4189_v24 = vpop.eup %4188  ;;  %v4639_v29 = vadd.f32 %v3994_v27, %v3487_v15  ;;  %v1590_v30 = vpop.f32.mrb[41].mxu1 }
 0x573   : > { %v4191_v43 = vpop.eup %4190  ;;  %v1718_v44 = vadd.f32 1.0, %v4189_v24  ;;  %v4641_v32 = vadd.f32 %v3487_v15, %v1590_v30 }
 0x574   : > { %v1717_v45 = vadd.f32 1.0, %v4191_v43 }
 0x575   : > { %v3997_v33 = vpop.f32.mrb[42].mxu1 }
 0x576   : > { %4192 = vrcp.f32 %v1717_v45  ;;  %v4644_v34 = vadd.f32 %v3997_v33, %v3487_v15  ;;  %v1600_v35 = vpop.f32.mrb[43].mxu1 }
 0x577   : > { %4194 = vrcp.f32 %v1718_v44  ;;  %v4646_v36 = vadd.f32 %v3487_v15, %v1600_v35 }
 0x579   : > { %v4000_v37 = vpop.f32.mrb[44].mxu1 }
 0x57a   : > { %v4648_v39 = vadd.f32 %v4000_v37, %v3487_v15  ;;  %v1610_v40 = vpop.f32.mrb[45].mxu1 }
 0x57b   : > { %v4650_v41 = vadd.f32 %v3487_v15, %v1610_v40 }
 0x57d   : > { %v4003_v42 = vpop.f32.mrb[46].mxu1 }
 0x57e   : > { %v4653_v58 = vadd.f32 %v4003_v42, %v3487_v15  ;;  %v1620_v59 = vpop.f32.mrb[47].mxu1 }
 0x57f   : > { %v4655_v60 = vadd.f32 %v3487_v15, %v1620_v59 }
 0x580   : > { %v4193_v57 = vpop.eup %4192 }
 0x581   : > { %v1723_v28 = vmul.f32 0.0, %v4193_v57  ;;  %v4195_v31 = vpop.eup %4194  ;;  %v1822_v7 = vsub.f32 1.0, %v4193_v57 }
 0x582   : > { %v1724_v38 = vmul.f32 0.0, %v4195_v31  ;;  %v1823_v11 = vsub.f32 1.0, %v4195_v31 }
 0x583   : > { %1727 = vrot.lane.b32.xlu0 %v1723_v28, %s4293_s29 }
 0x587   : > { %1729 = vrot.lane.b32.xlu0 %v1724_v38, %s4293_s29 }
 0x5f5   : > { %v1728_v62 = vpop.permute.xlu0 %1727 }
 0x5f6   : > { %4011 = vmatprep.mubr.msk.f32.mxu1 %vm689_vm2, %v1728_v62 }
 0x5f9   : > { %v1730_v63 = vpop.permute.xlu0 %1729 }
 0x5fa   : > { %4012 = vmatmul.mubr.msk.f32.vlgmr.msra.gmra.mrb[48].mxu1 %vm689_vm2, %v1730_v63 }
 0x5fb   : > { %4020 = vmatpush3.msra.mxu1 %v4616_v14 }
 0x5fc   : > { %4029 = vmatprep.subr.mxu1 %v4616_v14 }
 0x6cd   : > { %v4013_v0 = vpop.f32.mrb[48].mxu1 }
 0x6ce   : > { %v1801_v61 = vpop.f32.mrb[49].mxu1 }
 0x6cf   : > { %1812 = vrot.lane.b32.xlu1 %v1801_v61, %s4294_s30 }
 0x6d3   : > { %1814 = vrot.lane.b32.xlu1 %v4013_v0, %s4294_s30 }
 0x741   : > { %v1813_v1 = vpop.permute.xlu1 %1812 }
 0x742   : > { %v1818_v2 = vadd.f32 %v1813_v1, %v1551_v19 }
 0x744   : > { %4196 = vtanh.f32 %v1818_v2 }
 0x745   : > { %v1815_v3 = vpop.permute.xlu1 %1814 }
 0x746   : > { %v1819_v4 = vadd.f32 %v1815_v3, %v4624_v17 }
 0x748   : > { %4198 = vtanh.f32 %v1819_v4 }
 0x74e   : > { %v4197_v5 = vpop.eup %4196 }
 0x74f   : > { %1826 = vrot.lane.b32.xlu0 %v4197_v5, %s4295_s17 }
 0x752   : > { %v4199_v6 = vpop.eup %4198 }
 0x753   : > { %1828 = vrot.lane.b32.xlu1 %v4199_v6, %s4295_s17 }
 0x7c1   : > { %v1827_v8 = vpop.permute.xlu0 %1826 }
 0x7c2   : > { %v1832_v9 = vmul.f32 %v1827_v8, %v1822_v7 }
 0x7c4   : > { %v1834_v10 = vadd.f32 %v1832_v9, %v1723_v28 }
 0x7c5   : > { %v1829_v12 = vpop.permute.xlu1 %1828 }
 0x7c6   : > { %1836 = vst.msk [vmem:[%s4670_s15] sm:$0xff] %vm689_vm2, %v1834_v10  ;;  %v1833_v13 = vmul.f32 %v1829_v12, %v1823_v11  ;;  %4016 = vmatprep.mubr.msk.f32.mxu0 %vm689_vm2, %v1834_v10 }
 0x7c8   : > { %v1835_v15 = vadd.f32 %v1833_v13, %v1724_v38 }
 0x7ca   : > { %1837 = vst.msk [vmem:[%s4670_s15 + $0x8] sm:$0xff] %vm689_vm2, %v1835_v15  ;;  %4017 = vmatmul.mubr.msk.f32.vlgmr.msra.gmra.mrb[50].mxu0 %vm689_vm2, %v1835_v15 }
 0x7cb   : > { %4025 = vmatpush3.msra.mxu0 %v4572_v25 }
 0x7cc   : > { %4034 = vmatprep.subr.mxu0 %v4572_v25 }
 0x89d   : > { %v4018_v16 = vpop.f32.mrb[50].mxu0 }
 0x89e   : > { %v1920_v17 = vadd.f32 %v4018_v16, %v4627_v47  ;;  %v1910_v18 = vpop.f32.mrb[51].mxu0 }
 0x89f   : > { %v1919_v19 = vadd.f32 %v1910_v18, %v4629_v49 }
 0x8a0   : > { %v3511_v20 = vmul.f32 -1.442695, %v1920_v17 }
 0x8a1   : > { %v3510_v21 = vmul.f32 -1.442695, %v1919_v19 }
 0x8a2   : > { %4200 = vpow2.f32 %v3511_v20 }
 0x8a3   : > { %4202 = vpow2.f32 %v3510_v21 }
 0x8ac   : > { %v4201_v22 = vpop.eup %4200 }
 0x8ad   : > { %v4203_v23 = vpop.eup %4202  ;;  %v1928_v24 = vadd.f32 1.0, %v4201_v22 }
 0x8ae   : > { %v1927_v43 = vadd.f32 1.0, %v4203_v23 }
 0x8af   : > { %4204 = vrcp.f32 %v1928_v24 }
 0x8b0   : > { %4206 = vrcp.f32 %v1927_v43 }
 0x8b9   : > { %v4205_v44 = vpop.eup %4204 }
 0x8ba   : > { %v4207_v45 = vpop.eup %4206  ;;  %1937 = vrot.lane.b32.xlu1 %v4205_v44, %s4293_s29  ;;  %v2039_v35 = vsub.f32 1.0, %v4205_v44  ;;  %v2037_v40 = vmul.f32 %v4205_v44, %v1835_v15 }
 0x8bb   : > { %1935 = vrot.lane.b32.xlu0 %v4207_v45, %s4293_s29  ;;  %v2038_v38 = vsub.f32 1.0, %v4207_v45 }
 0x92c   : > { %v1938_v46 = vpop.permute.xlu1 %1937 }
 0x92d   : > { %v1936_v48 = vpop.permute.xlu0 %1935  ;;  %v1942_v52 = vmul.f32 %v1938_v46, %v1835_v15 }
 0x92e   : > { %v1941_v50 = vmul.f32 %v1936_v48, %v1834_v10 }
 0x930   : > { %4021 = vmatprep.mubr.msk.f32.mxu1 %vm689_vm2, %v1941_v50 }
 0x931   : > { %4022 = vmatmul.mubr.msk.f32.vlgmr.msra.gmra.mrb[50].mxu1 %vm689_vm2, %v1942_v52 }
 0x932   : > { %4030 = vmatpush3.msra.mxu1 %v4616_v14 }
 0x933   : > { %4039 = vmatprep.subr.mxu1 %v4616_v14 }
 0xa04   : > { %v4023_v54 = vpop.f32.mrb[50].mxu1 }
 0xa05   : > { %2028 = vrot.lane.b32.xlu1 %v4023_v54, %s4294_s30  ;;  %v2015_v56 = vpop.f32.mrb[51].mxu1 }
 0xa06   : > { %2026 = vrot.lane.b32.xlu0 %v2015_v56, %s4294_s30 }
 0xa77   : > { %v2029_v57 = vpop.permute.xlu1 %2028 }
 0xa78   : > { %v2033_v27 = vadd.f32 %v2029_v57, %v4627_v47  ;;  %v2027_v28 = vpop.permute.xlu0 %2026  ;;  %v2036_v47 = vmul.f32 %v4207_v45, %v1834_v10 }
 0xa79   : > { %v2032_v30 = vadd.f32 %v2027_v28, %v4629_v49 }
 0xa7a   : > { %4208 = vtanh.f32 %v2033_v27 }
 0xa7b   : > { %4210 = vtanh.f32 %v2032_v30 }
 0xa84   : > { %v4209_v31 = vpop.eup %4208 }
 0xa85   : > { %v4211_v33 = vpop.eup %4210  ;;  %2044 = vrot.lane.b32.xlu1 %v4209_v31, %s4295_s17 }
 0xa86   : > { %2042 = vrot.lane.b32.xlu0 %v4211_v33, %s4295_s17 }
 0xaf7   : > { %v2045_v37 = vpop.permute.xlu1 %2044 }
 0xaf8   : > { %v2049_v42 = vmul.f32 %v2045_v37, %v2039_v35  ;;  %v2043_v59 = vpop.permute.xlu0 %2042 }
 0xaf9   : > { %v2048_v62 = vmul.f32 %v2043_v59, %v2038_v38 }
 0xafa   : > { %v2051_v63 = vadd.f32 %v2049_v42, %v2037_v40 }
 0xafb   : > { %v2050_v49 = vadd.f32 %v2048_v62, %v2036_v47 }
 0xafc   : > { %3515 = vst.msk [vmem:[%s4670_s15 + $0x18] sm:$0xff] %vm689_vm2, %v2051_v63 }
 0xafd   : > { %3514 = vst.msk [vmem:[%s4670_s15 + $0x10] sm:$0xff] %vm689_vm2, %v2050_v49  ;;  %4026 = vmatprep.mubr.msk.f32.mxu0 %vm689_vm2, %v2050_v49 }
 0xafe   : > { %4027 = vmatmul.mubr.msk.f32.vlgmr.msra.gmra.mrb[52].mxu0 %vm689_vm2, %v2051_v63 }
 0xaff   : > { %4035 = vmatpush3.msra.mxu0 %v4572_v25 }
 0xb00   : > { %4044 = vmatprep.subr.mxu0 %v4572_v25 }
 0xbd1   : > { %v4028_v0 = vpop.f32.mrb[52].mxu0 }
 0xbd2   : > { %v2137_v61 = vadd.f32 %v4028_v0, %v4631_v51  ;;  %v2127_v1 = vpop.f32.mrb[53].mxu0 }
 0xbd3   : > { %v2136_v2 = vadd.f32 %v2127_v1, %v4633_v53 }
 0xbd4   : > { %v3519_v3 = vmul.f32 -1.442695, %v2137_v61 }
 0xbd5   : > { %v3518_v4 = vmul.f32 -1.442695, %v2136_v2 }
 0xbd6   : > { %4212 = vpow2.f32 %v3519_v3 }
 0xbd7   : > { %4214 = vpow2.f32 %v3518_v4 }
 0xbe0   : > { %v4213_v5 = vpop.eup %4212 }
 0xbe1   : > { %v4215_v6 = vpop.eup %4214  ;;  %v2145_v7 = vadd.f32 1.0, %v4213_v5 }
 0xbe2   : > { %v2144_v8 = vadd.f32 1.0, %v4215_v6 }
 0xbe3   : > { %4216 = vrcp.f32 %v2145_v7 }
 0xbe4   : > { %4218 = vrcp.f32 %v2144_v8 }
 0xbed   : > { %v4217_v9 = vpop.eup %4216 }
 0xbee   : > { %v4219_v10 = vpop.eup %4218  ;;  %2154 = vrot.lane.b32.xlu1 %v4217_v9, %s4293_s29  ;;  %v2256_v24 = vsub.f32 1.0, %v4217_v9  ;;  %v2254_v45 = vmul.f32 %v4217_v9, %v2051_v63 }
 0xbef   : > { %2152 = vrot.lane.b32.xlu0 %v4219_v10, %s4293_s29  ;;  %v2255_v44 = vsub.f32 1.0, %v4219_v10 }
 0xc60   : > { %v2155_v11 = vpop.permute.xlu1 %2154 }
 0xc61   : > { %v2153_v12 = vpop.permute.xlu0 %2152  ;;  %v2159_v15 = vmul.f32 %v2155_v11, %v2051_v63 }
 0xc62   : > { %v2158_v13 = vmul.f32 %v2153_v12, %v2050_v49 }
 0xc64   : > { %4031 = vmatprep.mubr.msk.f32.mxu1 %vm689_vm2, %v2158_v13 }
 0xc65   : > { %4032 = vmatmul.mubr.msk.f32.vlgmr.msra.gmra.mrb[52].mxu1 %vm689_vm2, %v2159_v15 }
 0xc66   : > { %4040 = vmatpush3.msra.mxu1 %v4616_v14 }
 0xc67   : > { %4049 = vmatprep.subr.mxu1 %v4616_v14 }
 0xd38   : > { %v4033_v16 = vpop.f32.mrb[52].mxu1 }
 0xd39   : > { %2245 = vrot.lane.b32.xlu1 %v4033_v16, %s4294_s30  ;;  %v2232_v17 = vpop.f32.mrb[53].mxu1 }
 0xd3a   : > { %2243 = vrot.lane.b32.xlu0 %v2232_v17, %s4294_s30 }
 0xdab   : > { %v2246_v18 = vpop.permute.xlu1 %2245 }
 0xdac   : > { %v2250_v19 = vadd.f32 %v2246_v18, %v4631_v51  ;;  %v2244_v20 = vpop.permute.xlu0 %2243  ;;  %v2253_v51 = vmul.f32 %v4219_v10, %v2050_v49 }
 0xdad   : > { %v2249_v21 = vadd.f32 %v2244_v20, %v4633_v53 }
 0xdae   : > { %4220 = vtanh.f32 %v2250_v19 }
 0xdaf   : > { %4222 = vtanh.f32 %v2249_v21 }
 0xdb8   : > { %v4221_v22 = vpop.eup %4220 }
 0xdb9   : > { %v4223_v23 = vpop.eup %4222  ;;  %2261 = vrot.lane.b32.xlu1 %v4221_v22, %s4295_s17 }
 0xdba   : > { %2259 = vrot.lane.b32.xlu0 %v4223_v23, %s4295_s17 }
 0xe2b   : > { %v2262_v43 = vpop.permute.xlu1 %2261 }
 0xe2c   : > { %v2266_v46 = vmul.f32 %v2262_v43, %v2256_v24  ;;  %v2260_v48 = vpop.permute.xlu0 %2259 }
 0xe2d   : > { %v2265_v50 = vmul.f32 %v2260_v48, %v2255_v44 }
 0xe2e   : > { %v2268_v52 = vadd.f32 %v2266_v46, %v2254_v45 }
 0xe2f   : > { %v2267_v53 = vadd.f32 %v2265_v50, %v2253_v51 }
 0xe30   : > { %3523 = vst.msk [vmem:[%s4670_s15 + $0x28] sm:$0xff] %vm689_vm2, %v2268_v52 }
 0xe31   : > { %3522 = vst.msk [vmem:[%s4670_s15 + $0x20] sm:$0xff] %vm689_vm2, %v2267_v53  ;;  %4036 = vmatprep.mubr.msk.f32.mxu0 %vm689_vm2, %v2267_v53 }
 0xe32   : > { %4037 = vmatmul.mubr.msk.f32.vlgmr.msra.gmra.mrb[54].mxu0 %vm689_vm2, %v2268_v52 }
 0xe33   : > { %4045 = vmatpush3.msra.mxu0 %v4572_v25 }
 0xe34   : > { %4054 = vmatprep.subr.mxu0 %v4572_v25 }
 0xf05   : > { %v4038_v54 = vpop.f32.mrb[54].mxu0 }
 0xf06   : > { %v2354_v56 = vadd.f32 %v4038_v54, %v4635_v55  ;;  %v2344_v57 = vpop.f32.mrb[55].mxu0 }
 0xf07   : > { %v2353_v27 = vadd.f32 %v2344_v57, %v4637_v26 }
 0xf08   : > { %v3527_v28 = vmul.f32 -1.442695, %v2354_v56 }
 0xf09   : > { %v3526_v30 = vmul.f32 -1.442695, %v2353_v27 }
 0xf0a   : > { %4224 = vpow2.f32 %v3527_v28 }
 0xf0b   : > { %4226 = vpow2.f32 %v3526_v30 }
 0xf14   : > { %v4225_v31 = vpop.eup %4224 }
 0xf15   : > { %v4227_v33 = vpop.eup %4226  ;;  %v2362_v35 = vadd.f32 1.0, %v4225_v31 }
 0xf16   : > { %v2361_v37 = vadd.f32 1.0, %v4227_v33 }
 0xf17   : > { %4228 = vrcp.f32 %v2362_v35 }
 0xf18   : > { %4230 = vrcp.f32 %v2361_v37 }
 0xf21   : > { %v4229_v38 = vpop.eup %4228 }
 0xf22   : > { %v4231_v40 = vpop.eup %4230  ;;  %2371 = vrot.lane.b32.xlu1 %v4229_v38, %s4293_s29  ;;  %v2473_v5 = vsub.f32 1.0, %v4229_v38  ;;  %v2471_v8 = vmul.f32 %v4229_v38, %v2268_v52 }
 0xf23   : > { %2369 = vrot.lane.b32.xlu0 %v4231_v40, %s4293_s29  ;;  %v2472_v7 = vsub.f32 1.0, %v4231_v40 }
 0xf94   : > { %v2372_v42 = vpop.permute.xlu1 %2371 }
 0xf95   : > { %v2370_v59 = vpop.permute.xlu0 %2369  ;;  %v2376_v62 = vmul.f32 %v2372_v42, %v2268_v52 }
 0xf96   : > { %v2375_v47 = vmul.f32 %v2370_v59, %v2267_v53 }
 0xf98   : > { %4041 = vmatprep.mubr.msk.f32.mxu1 %vm689_vm2, %v2375_v47 }
 0xf99   : > { %4042 = vmatmul.mubr.msk.f32.vlgmr.msra.gmra.mrb[54].mxu1 %vm689_vm2, %v2376_v62 }
 0xf9a   : > { %4050 = vmatpush3.msra.mxu1 %v4616_v14 }
 0xf9b   : > { %4059 = vmatprep.subr.mxu1 %v4616_v14 }
0x106c   : > { %v4043_v63 = vpop.f32.mrb[54].mxu1 }
0x106d   : > { %2462 = vrot.lane.b32.xlu1 %v4043_v63, %s4294_s30  ;;  %v2449_v49 = vpop.f32.mrb[55].mxu1 }
0x106e   : > { %2460 = vrot.lane.b32.xlu0 %v2449_v49, %s4294_s30 }
0x10df   : > { %v2463_v0 = vpop.permute.xlu1 %2462 }
0x10e0   : > { %v2467_v61 = vadd.f32 %v2463_v0, %v4635_v55  ;;  %v2461_v1 = vpop.permute.xlu0 %2460  ;;  %v2470_v55 = vmul.f32 %v4231_v40, %v2267_v53 }
0x10e1   : > { %v2466_v2 = vadd.f32 %v2461_v1, %v4637_v26 }
0x10e2   : > { %4232 = vtanh.f32 %v2467_v61 }
0x10e3   : > { %4234 = vtanh.f32 %v2466_v2 }
0x10ec   : > { %v4233_v3 = vpop.eup %4232 }
0x10ed   : > { %v4235_v4 = vpop.eup %4234  ;;  %2478 = vrot.lane.b32.xlu1 %v4233_v3, %s4295_s17 }
0x10ee   : > { %2476 = vrot.lane.b32.xlu0 %v4235_v4, %s4295_s17 }
0x115f   : > { %v2479_v6 = vpop.permute.xlu1 %2478 }
0x1160   : > { %v2483_v9 = vmul.f32 %v2479_v6, %v2473_v5  ;;  %v2477_v10 = vpop.permute.xlu0 %2476 }
0x1161   : > { %v2482_v11 = vmul.f32 %v2477_v10, %v2472_v7 }
0x1162   : > { %v2485_v12 = vadd.f32 %v2483_v9, %v2471_v8 }
0x1163   : > { %v2484_v26 = vadd.f32 %v2482_v11, %v2470_v55 }
0x1164   : > { %3531 = vst.msk [vmem:[%s4670_s15 + $0x38] sm:$0xff] %vm689_vm2, %v2485_v12 }
0x1165   : > { %3530 = vst.msk [vmem:[%s4670_s15 + $0x30] sm:$0xff] %vm689_vm2, %v2484_v26  ;;  %4046 = vmatprep.mubr.msk.f32.mxu0 %vm689_vm2, %v2484_v26 }
0x1166   : > { %4047 = vmatmul.mubr.msk.f32.vlgmr.msra.gmra.mrb[56].mxu0 %vm689_vm2, %v2485_v12 }
0x1167   : > { %4055 = vmatpush3.msra.mxu0 %v4572_v25 }
0x1168   : > { %4064 = vmatprep.subr.mxu0 %v4572_v25 }
0x1239   : > { %v4048_v13 = vpop.f32.mrb[56].mxu0 }
0x123a   : > { %v2571_v15 = vadd.f32 %v4048_v13, %v4639_v29  ;;  %v2561_v16 = vpop.f32.mrb[57].mxu0 }
0x123b   : > { %v2570_v17 = vadd.f32 %v2561_v16, %v4641_v32 }
0x123c   : > { %v3535_v18 = vmul.f32 -1.442695, %v2571_v15 }
0x123d   : > { %v3534_v19 = vmul.f32 -1.442695, %v2570_v17 }
0x123e   : > { %4236 = vpow2.f32 %v3535_v18 }
0x123f   : > { %4238 = vpow2.f32 %v3534_v19 }
0x1248   : > { %v4237_v20 = vpop.eup %4236 }
0x1249   : > { %v4239_v21 = vpop.eup %4238  ;;  %v2579_v22 = vadd.f32 1.0, %v4237_v20 }
0x124a   : > { %v2578_v23 = vadd.f32 1.0, %v4239_v21 }
0x124b   : > { %4240 = vrcp.f32 %v2579_v22 }
0x124c   : > { %4242 = vrcp.f32 %v2578_v23 }
0x1255   : > { %v4241_v24 = vpop.eup %4240 }
0x1256   : > { %v4243_v43 = vpop.eup %4242  ;;  %2588 = vrot.lane.b32.xlu1 %v4241_v24, %s4293_s29  ;;  %v2690_v28 = vsub.f32 1.0, %v4241_v24  ;;  %v2688_v33 = vmul.f32 %v4241_v24, %v2485_v12 }
0x1257   : > { %2586 = vrot.lane.b32.xlu0 %v4243_v43, %s4293_s29  ;;  %v2689_v31 = vsub.f32 1.0, %v4243_v43 }
0x12c8   : > { %v2589_v44 = vpop.permute.xlu1 %2588 }
0x12c9   : > { %v2587_v45 = vpop.permute.xlu0 %2586  ;;  %v2593_v48 = vmul.f32 %v2589_v44, %v2485_v12 }
0x12ca   : > { %v2592_v46 = vmul.f32 %v2587_v45, %v2484_v26 }
0x12cc   : > { %4051 = vmatprep.mubr.msk.f32.mxu1 %vm689_vm2, %v2592_v46 }
0x12cd   : > { %4052 = vmatmul.mubr.msk.f32.vlgmr.msra.gmra.mrb[56].mxu1 %vm689_vm2, %v2593_v48 }
0x12ce   : > { %4060 = vmatpush3.msra.mxu1 %v4616_v14 }
0x12cf   : > { %4069 = vmatprep.subr.mxu1 %v4616_v14 }
0x13a0   : > { %v4053_v51 = vpop.f32.mrb[56].mxu1 }
0x13a1   : > { %2679 = vrot.lane.b32.xlu1 %v4053_v51, %s4294_s30  ;;  %v2666_v50 = vpop.f32.mrb[57].mxu1 }
0x13a2   : > { %2677 = vrot.lane.b32.xlu0 %v2666_v50, %s4294_s30 }
0x1413   : > { %v2680_v52 = vpop.permute.xlu1 %2679 }
0x1414   : > { %v2684_v53 = vadd.f32 %v2680_v52, %v4639_v29  ;;  %v2678_v54 = vpop.permute.xlu0 %2677  ;;  %v2687_v29 = vmul.f32 %v4243_v43, %v2484_v26 }
0x1415   : > { %v2683_v56 = vadd.f32 %v2678_v54, %v4641_v32 }
0x1416   : > { %4244 = vtanh.f32 %v2684_v53 }
0x1417   : > { %4246 = vtanh.f32 %v2683_v56 }
0x1420   : > { %v4245_v57 = vpop.eup %4244 }
0x1421   : > { %v4247_v27 = vpop.eup %4246  ;;  %2695 = vrot.lane.b32.xlu1 %v4245_v57, %s4295_s17 }
0x1422   : > { %2693 = vrot.lane.b32.xlu0 %v4247_v27, %s4295_s17 }
0x1493   : > { %v2696_v30 = vpop.permute.xlu1 %2695 }
0x1494   : > { %v2700_v35 = vmul.f32 %v2696_v30, %v2690_v28  ;;  %v2694_v37 = vpop.permute.xlu0 %2693 }
0x1495   : > { %v2699_v38 = vmul.f32 %v2694_v37, %v2689_v31 }
0x1496   : > { %v2702_v40 = vadd.f32 %v2700_v35, %v2688_v33 }
0x1497   : > { %v2701_v32 = vadd.f32 %v2699_v38, %v2687_v29 }
0x1498   : > { %3539 = vst.msk [vmem:[%s4670_s15 + $0x48] sm:$0xff] %vm689_vm2, %v2702_v40 }
0x1499   : > { %3538 = vst.msk [vmem:[%s4670_s15 + $0x40] sm:$0xff] %vm689_vm2, %v2701_v32  ;;  %4056 = vmatprep.mubr.msk.f32.mxu0 %vm689_vm2, %v2701_v32 }
0x149a   : > { %4057 = vmatmul.mubr.msk.f32.vlgmr.msra.gmra.mrb[58].mxu0 %vm689_vm2, %v2702_v40 }
0x149b   : > { %4065 = vmatpush3.msra.mxu0 %v4572_v25 }
0x149c   : > { %4074 = vmatprep.subr.mxu0 %v4572_v25 }
0x156d   : > { %v4058_v42 = vpop.f32.mrb[58].mxu0 }
0x156e   : > { %v2788_v59 = vadd.f32 %v4058_v42, %v4644_v34  ;;  %v2778_v47 = vpop.f32.mrb[59].mxu0 }
0x156f   : > { %v2787_v62 = vadd.f32 %v2778_v47, %v4646_v36 }
0x1570   : > { %v3543_v63 = vmul.f32 -1.442695, %v2788_v59 }
0x1571   : > { %v3542_v49 = vmul.f32 -1.442695, %v2787_v62 }
0x1572   : > { %4248 = vpow2.f32 %v3543_v63 }
0x1573   : > { %4250 = vpow2.f32 %v3542_v49 }
0x157c   : > { %v4249_v0 = vpop.eup %4248 }
0x157d   : > { %v4251_v61 = vpop.eup %4250  ;;  %v2796_v1 = vadd.f32 1.0, %v4249_v0 }
0x157e   : > { %v2795_v2 = vadd.f32 1.0, %v4251_v61 }
0x157f   : > { %4252 = vrcp.f32 %v2796_v1 }
0x1580   : > { %4254 = vrcp.f32 %v2795_v2 }
0x1589   : > { %v4253_v3 = vpop.eup %4252 }
0x158a   : > { %v4255_v4 = vpop.eup %4254  ;;  %2805 = vrot.lane.b32.xlu1 %v4253_v3, %s4293_s29  ;;  %v2907_v16 = vsub.f32 1.0, %v4253_v3  ;;  %v2905_v19 = vmul.f32 %v4253_v3, %v2702_v40 }
0x158b   : > { %2803 = vrot.lane.b32.xlu0 %v4255_v4, %s4293_s29  ;;  %v2906_v18 = vsub.f32 1.0, %v4255_v4 }
0x15fc   : > { %v2806_v5 = vpop.permute.xlu1 %2805 }
0x15fd   : > { %v2804_v6 = vpop.permute.xlu0 %2803  ;;  %v2810_v8 = vmul.f32 %v2806_v5, %v2702_v40 }
0x15fe   : > { %v2809_v7 = vmul.f32 %v2804_v6, %v2701_v32 }
0x1600   : > { %4061 = vmatprep.mubr.msk.f32.mxu1 %vm689_vm2, %v2809_v7 }
0x1601   : > { %4062 = vmatmul.mubr.msk.f32.vlgmr.msra.gmra.mrb[58].mxu1 %vm689_vm2, %v2810_v8 }
0x1602   : > { %4070 = vmatpush3.msra.mxu1 %v4616_v14 }
0x1603   : > { %4079 = vmatprep.subr.mxu1 %v4616_v14 }
0x16d4   : > { %v4063_v9 = vpop.f32.mrb[58].mxu1 }
0x16d5   : > { %2896 = vrot.lane.b32.xlu1 %v4063_v9, %s4294_s30  ;;  %v2883_v10 = vpop.f32.mrb[59].mxu1 }
0x16d6   : > { %2894 = vrot.lane.b32.xlu0 %v2883_v10, %s4294_s30 }
0x1747   : > { %v2897_v55 = vpop.permute.xlu1 %2896 }
0x1748   : > { %v2901_v11 = vadd.f32 %v2897_v55, %v4644_v34  ;;  %v2895_v12 = vpop.permute.xlu0 %2894  ;;  %v2904_v34 = vmul.f32 %v4255_v4, %v2701_v32 }
0x1749   : > { %v2900_v26 = vadd.f32 %v2895_v12, %v4646_v36 }
0x174a   : > { %4256 = vtanh.f32 %v2901_v11 }
0x174b   : > { %4258 = vtanh.f32 %v2900_v26 }
0x1754   : > { %v4257_v13 = vpop.eup %4256 }
0x1755   : > { %v4259_v15 = vpop.eup %4258  ;;  %2912 = vrot.lane.b32.xlu1 %v4257_v13, %s4295_s17 }
0x1756   : > { %2910 = vrot.lane.b32.xlu0 %v4259_v15, %s4295_s17 }
0x17c7   : > { %v2913_v17 = vpop.permute.xlu1 %2912 }
0x17c8   : > { %v2917_v20 = vmul.f32 %v2913_v17, %v2907_v16  ;;  %v2911_v21 = vpop.permute.xlu0 %2910 }
0x17c9   : > { %v2916_v22 = vmul.f32 %v2911_v21, %v2906_v18 }
0x17ca   : > { %v2919_v23 = vadd.f32 %v2917_v20, %v2905_v19 }
0x17cb   : > { %v2918_v36 = vadd.f32 %v2916_v22, %v2904_v34 }
0x17cc   : > { %3547 = vst.msk [vmem:[%s4670_s15 + $0x58] sm:$0xff] %vm689_vm2, %v2919_v23 }
0x17cd   : > { %3546 = vst.msk [vmem:[%s4670_s15 + $0x50] sm:$0xff] %vm689_vm2, %v2918_v36  ;;  %4066 = vmatprep.mubr.msk.f32.mxu0 %vm689_vm2, %v2918_v36 }
0x17ce   : > { %4067 = vmatmul.mubr.msk.f32.vlgmr.msra.gmra.mrb[60].mxu0 %vm689_vm2, %v2919_v23 }
0x17cf   : > { %4075 = vmatpush3.msra.mxu0 %v4572_v25 }
0x18a1   : > { %v4068_v24 = vpop.f32.mrb[60].mxu0 }
0x18a2   : > { %v3005_v43 = vadd.f32 %v4068_v24, %v4648_v39  ;;  %v2995_v44 = vpop.f32.mrb[61].mxu0 }
0x18a3   : > { %v3004_v45 = vadd.f32 %v2995_v44, %v4650_v41 }
0x18a4   : > { %v3551_v46 = vmul.f32 -1.442695, %v3005_v43 }
0x18a5   : > { %v3550_v48 = vmul.f32 -1.442695, %v3004_v45 }
0x18a6   : > { %4260 = vpow2.f32 %v3551_v46 }
0x18a7   : > { %4262 = vpow2.f32 %v3550_v48 }
0x18b0   : > { %v4261_v51 = vpop.eup %4260 }
0x18b1   : > { %v4263_v50 = vpop.eup %4262  ;;  %v3013_v52 = vadd.f32 1.0, %v4261_v51 }
0x18b2   : > { %v3012_v53 = vadd.f32 1.0, %v4263_v50 }
0x18b3   : > { %4264 = vrcp.f32 %v3013_v52 }
0x18b4   : > { %4266 = vrcp.f32 %v3012_v53 }
0x18bd   : > { %v4265_v54 = vpop.eup %4264 }
0x18be   : > { %v4267_v56 = vpop.eup %4266  ;;  %3022 = vrot.lane.b32.xlu1 %v4265_v54, %s4293_s29  ;;  %v3122_v59 = vmul.f32 %v4265_v54, %v2919_v23 }
0x18bf   : > { %3020 = vrot.lane.b32.xlu0 %v4267_v56, %s4293_s29  ;;  %v3123_v42 = vsub.f32 1.0, %v4267_v56 }
0x1930   : > { %v3023_v25 = vpop.permute.xlu1 %3022 }
0x1931   : > { %v3021_v57 = vpop.permute.xlu0 %3020  ;;  %v3027_v28 = vmul.f32 %v3023_v25, %v2919_v23 }
0x1932   : > { %v3026_v27 = vmul.f32 %v3021_v57, %v2918_v36 }
0x1934   : > { %4071 = vmatprep.mubr.msk.f32.mxu1 %vm689_vm2, %v3026_v27 }
0x1935   : > { %4072 = vmatmul.mubr.msk.f32.vlgmr.msra.gmra.mrb[60].mxu1 %vm689_vm2, %v3027_v28 }
0x1936   : > { %4080 = vmatpush3.msra.mxu1 %v4616_v14  ;;  %v3124_v14 = vsub.f32 1.0, %v4265_v54 }
0x1a08   : > { %v4073_v30 = vpop.f32.mrb[60].mxu1 }
0x1a09   : > { %3113 = vrot.lane.b32.xlu1 %v4073_v30, %s4294_s30  ;;  %v3100_v31 = vpop.f32.mrb[61].mxu1 }
0x1a0a   : > { %3111 = vrot.lane.b32.xlu0 %v3100_v31, %s4294_s30 }
0x1a7b   : > { %v3114_v33 = vpop.permute.xlu1 %3113 }
0x1a7c   : > { %v3118_v35 = vadd.f32 %v3114_v33, %v4648_v39  ;;  %v3112_v37 = vpop.permute.xlu0 %3111  ;;  %v3121_v39 = vmul.f32 %v4267_v56, %v2918_v36 }
0x1a7d   : > { %v3117_v29 = vadd.f32 %v3112_v37, %v4650_v41 }
0x1a7e   : > { %4268 = vtanh.f32 %v3118_v35 }
0x1a7f   : > { %4270 = vtanh.f32 %v3117_v29 }
0x1a88   : > { %v4269_v38 = vpop.eup %4268 }
0x1a89   : > { %v4271_v40 = vpop.eup %4270  ;;  %3129 = vrot.lane.b32.xlu1 %v4269_v38, %s4295_s17 }
0x1a8a   : > { %3127 = vrot.lane.b32.xlu0 %v4271_v40, %s4295_s17 }
0x1afb   : > { %v3130_v32 = vpop.permute.xlu1 %3129 }
0x1afc   : > { %v3134_v47 = vmul.f32 %v3130_v32, %v3124_v14  ;;  %v3128_v62 = vpop.permute.xlu0 %3127 }
0x1afd   : > { %v3133_v63 = vmul.f32 %v3128_v62, %v3123_v42 }
0x1afe   : > { %v3136_v49 = vadd.f32 %v3134_v47, %v3122_v59 }
0x1aff   : > { %v3135_v41 = vadd.f32 %v3133_v63, %v3121_v39 }
0x1b00   : > { %3555 = vst.msk [vmem:[%s4670_s15 + $0x68] sm:$0xff] %vm689_vm2, %v3136_v49 }
0x1b01   : > { %3554 = vst.msk [vmem:[%s4670_s15 + $0x60] sm:$0xff] %vm689_vm2, %v3135_v41  ;;  %4076 = vmatprep.mubr.msk.f32.mxu0 %vm689_vm2, %v3135_v41 }
0x1b02   : > { %4077 = vmatmul.mubr.msk.f32.vlgmr.msra.gmra.mrb[62].mxu0 %vm689_vm2, %v3136_v49 }
0x1bd5   : > { %v4078_v0 = vpop.f32.mrb[62].mxu0 }
0x1bd6   : > { %v3222_v61 = vadd.f32 %v4078_v0, %v4653_v58  ;;  %v3212_v1 = vpop.f32.mrb[63].mxu0 }
0x1bd7   : > { %v3221_v2 = vadd.f32 %v3212_v1, %v4655_v60 }
0x1bd8   : > { %v3559_v3 = vmul.f32 -1.442695, %v3222_v61 }
0x1bd9   : > { %v3558_v4 = vmul.f32 -1.442695, %v3221_v2 }
0x1bda   : > { %4272 = vpow2.f32 %v3559_v3 }
0x1bdb   : > { %4274 = vpow2.f32 %v3558_v4 }
0x1be4   : > { %v4273_v5 = vpop.eup %4272 }
0x1be5   : > { %v4275_v6 = vpop.eup %4274  ;;  %v3230_v7 = vadd.f32 1.0, %v4273_v5 }
0x1be6   : > { %v3229_v8 = vadd.f32 1.0, %v4275_v6 }
0x1be7   : > { %4276 = vrcp.f32 %v3230_v7 }
0x1be8   : > { %4278 = vrcp.f32 %v3229_v8 }
0x1bf1   : > { %v4277_v9 = vpop.eup %4276 }
0x1bf2   : > { %v4279_v10 = vpop.eup %4278  ;;  %3239 = vrot.lane.b32.xlu1 %v4277_v9, %s4293_s29  ;;  %v3341_v34 = vsub.f32 1.0, %v4277_v9  ;;  %v3339_v36 = vmul.f32 %v4277_v9, %v3136_v49 }
0x1bf3   : > { %3237 = vrot.lane.b32.xlu0 %v4279_v10, %s4293_s29  ;;  %v3340_v23 = vsub.f32 1.0, %v4279_v10 }
0x1c64   : > { %v3240_v55 = vpop.permute.xlu1 %3239 }
0x1c65   : > { %v3238_v11 = vpop.permute.xlu0 %3237  ;;  %v3244_v26 = vmul.f32 %v3240_v55, %v3136_v49 }
0x1c66   : > { %v3243_v12 = vmul.f32 %v3238_v11, %v3135_v41 }
0x1c68   : > { %4081 = vmatprep.mubr.msk.f32.mxu1 %vm689_vm2, %v3243_v12 }
0x1c69   : > { %4082 = vmatmul.mubr.msk.f32.vlgmr.msra.gmra.mrb[62].mxu1 %vm689_vm2, %v3244_v26 }
0x1d3c   : > { %v4083_v13 = vpop.f32.mrb[62].mxu1 }
0x1d3d   : > { %3330 = vrot.lane.b32.xlu1 %v4083_v13, %s4294_s30  ;;  %v3317_v15 = vpop.f32.mrb[63].mxu1 }
0x1d3e   : > { %3328 = vrot.lane.b32.xlu0 %v3317_v15, %s4294_s30 }
0x1daf   : > { %v3331_v16 = vpop.permute.xlu1 %3330 }
0x1db0   : > { %v3335_v17 = vadd.f32 %v3331_v16, %v4653_v58  ;;  %v3329_v18 = vpop.permute.xlu0 %3328  ;;  %v3338_v58 = vmul.f32 %v4279_v10, %v3135_v41 }
0x1db1   : > { %v3334_v19 = vadd.f32 %v3329_v18, %v4655_v60 }
0x1db2   : > { %4280 = vtanh.f32 %v3335_v17 }
0x1db3   : > { %4282 = vtanh.f32 %v3334_v19 }
0x1dbc   : > { %v4281_v20 = vpop.eup %4280 }
0x1dbd   : > { %v4283_v21 = vpop.eup %4282  ;;  %3346 = vrot.lane.b32.xlu1 %v4281_v20, %s4295_s17 }
0x1dbe   : > { %3344 = vrot.lane.b32.xlu0 %v4283_v21, %s4295_s17 }
0x1e2f   : > { %v3347_v22 = vpop.permute.xlu1 %3346 }
0x1e30   : > { %v3351_v24 = vmul.f32 %v3347_v22, %v3341_v34  ;;  %v3345_v43 = vpop.permute.xlu0 %3344 }
0x1e31   : > { %v3350_v44 = vmul.f32 %v3345_v43, %v3340_v23 }
0x1e32   : > { %v3353_v45 = vadd.f32 %v3351_v24, %v3339_v36 }
0x1e33   : > { %v3352_v60 = vadd.f32 %v3350_v44, %v3338_v58 }
0x1e34   : > { %3563 = vst.msk [vmem:[%s4670_s15 + $0x78] sm:$0xff] %vm689_vm2, %v3353_v45 }
0x1e35   : > { %3562 = vst.msk [vmem:[%s4670_s15 + $0x70] sm:$0xff] %vm689_vm2, %v3352_v60 }
0x1e36 PF: > { %s22_s21 = sadd.s32 1, %s4290_s21  }
0x1e37   : > { %p19_p4 = scmp.ge.s32.totalorder %s22_s21, 4  }
0x1e39   :  { %21 = sbr.rel (!%p19_p4) target bundleno = 1 (0x1), region = 108 }

</bundles_post_ra>
